<compile_context>
chip_gen: v6e
topology: v6e:2x2x1
jax: 0.10.0
libtpu: 0.0.40
codegen_flags: <defaults>
</compile_context>

<pallas_src>
import math

import jax
import jax.numpy as jnp
from jax.experimental import pallas as pl
from jax.experimental.pallas import tpu as pltpu


# ---------------------------------------------------------------------------
# small helpers
# ---------------------------------------------------------------------------
def _round_up(x, m):
    return (x + m - 1) // m * m


def _cdiv(a, b):
    return (a + b - 1) // b


# ---------------------------------------------------------------------------
# one-time probe: is pipeline_mode=pl.Buffered(1) (single-buffered residents) usable?
# ---------------------------------------------------------------------------
_SINGLE_BUFFER_OK = None


def _probe_kernel(x_ref, o_ref):
    o_ref[...] = x_ref[...] + 1.0


def _probe_single_buffer():
    """Run once, OUTSIDE jit.  Sets a module flag used when building BlockSpecs."""
    global _SINGLE_BUFFER_OK
    if _SINGLE_BUFFER_OK is not None:
        return _SINGLE_BUFFER_OK
    try:
        spec = pl.BlockSpec((8, 128), lambda i: (0, 0), pipeline_mode=pl.Buffered(1))
        f = pl.pallas_call(
            _probe_kernel,
            out_shape=jax.ShapeDtypeStruct((16, 128), jnp.float32),
            grid=(2,),
            in_specs=[spec],
            out_specs=pl.BlockSpec((8, 128), lambda i: (i, 0)),
        )
        jax.block_until_ready(f(jnp.zeros((8, 128), jnp.float32)))
        _SINGLE_BUFFER_OK = True
    except Exception:
        _SINGLE_BUFFER_OK = False
    return _SINGLE_BUFFER_OK


def _resident_spec(block_shape, index_map):
    """BlockSpec for a constant-index resident block (weights/biases)."""
    if _SINGLE_BUFFER_OK:
        return pl.BlockSpec(block_shape, index_map, pipeline_mode=pl.Buffered(1))
    return pl.BlockSpec(block_shape, index_map)


# ---------------------------------------------------------------------------
# planning: per-generation VMEM budget -> chunk sizes
# ---------------------------------------------------------------------------
def _plan(T, B, Hp, Op, max_time_chunk=None):
    try:
        vmem_cap = int(pltpu.get_tpu_info().vmem_capacity_bytes)
    except Exception:
        vmem_cap = 64 << 20                       # conservative (v7x-sized) fallback
    budget = (vmem_cap * 3) // 4                  # ~48 MiB on 64 MiB parts, ~96 on 128

    Bp = _round_up(B, 8)
    resident = Hp * 3 * Hp * 2 + Hp * Op * 2 + 4 * Hp * 4 + Op * 4    # bf16 W, f32 b
    if not _SINGLE_BUFFER_OK:
        resident *= 2                             # double-buffered residents
    resident += Bp * Hp * 4                       # f32 h carry scratch

    per_tc = Bp * Hp * 16                         # bf16 GI in + bf16 hs out, double-buffered
    avail = max(0, budget - resident)
    tc_cap = max_time_chunk if max_time_chunk else 64
    Tc = max(1, min(tc_cap, T, avail // per_tc if per_tc else T))
    nC = _cdiv(T, Tc)
    T_pad = nC * Tc

    # batch tile: only split when each tile still fills the MXU sublane rows
    Bb = Bp if (Bp <= 128 or Bp % 128 != 0) else 128
    return dict(Bp=Bp, Bb=Bb, Tc=Tc, nC=nC, T_pad=T_pad, vmem_limit=int(budget))


# ---------------------------------------------------------------------------
# one-time weight preparation (outside the jitted forward)
# ---------------------------------------------------------------------------
def _pad_gate_weight(w, Hp, in_pad):
    """w: (3H, in_dim) PyTorch [r; z; n]  ->  (in_pad, 3*Hp) bf16, gate blocks on Hp."""
    threeH, in_dim = w.shape
    H = threeH // 3
    w3 = w.reshape(3, H, in_dim).transpose(2, 0, 1)          # (in, 3, H)
    w3 = jnp.pad(w3, ((0, 0), (0, 0), (0, Hp - H)))          # (in, 3, Hp)
    w_p = w3.reshape(in_dim, 3 * Hp)
    if in_pad > in_dim:
        w_p = jnp.pad(w_p, ((0, in_pad - in_dim), (0, 0)))
    return w_p.astype(jnp.bfloat16)


def prepare_params(params):
    """Pad / transpose / cast all weights once; fold r,z parts of b_hh into b_ih."""
    _probe_single_buffer()
    layers = params["gru_layers"]
    H = layers[0]["w_hh"].shape[1]
    O = params["w_fc"].shape[0]
    Hp = _round_up(H, 128)
    Op = _round_up(O, 128)

    prepped_layers = []
    for l, layer in enumerate(layers):
        in_dim = layer["w_ih"].shape[1]
        in_pad = Hp if l > 0 else in_dim
        w_ih_p = _pad_gate_weight(layer["w_ih"], Hp, in_pad)
        w_hh_p = _pad_gate_weight(layer["w_hh"], Hp, Hp)
        b3_ih = layer["b_ih"].reshape(3, H)
        b3_hh = layer["b_hh"].reshape(3, H)
        # fold b_hr, b_hz into the projection bias; only b_hn stays in the recurrence
        b_gi = jnp.stack([b3_ih[0] + b3_hh[0], b3_ih[1] + b3_hh[1], b3_ih[2]])
        b_gi_p = jnp.pad(b_gi, ((0, 0), (0, Hp - H))).reshape(1, 3 * Hp).astype(jnp.float32)
        b_hn_p = jnp.pad(b3_hh[2], (0, Hp - H)).reshape(1, Hp).astype(jnp.float32)
        prepped_layers.append(dict(w_ih=w_ih_p, b_gi=b_gi_p, w_hh=w_hh_p, b_hn=b_hn_p))

    w_fc_p = jnp.pad(params["w_fc"].T, ((0, Hp - H), (0, Op - O))).astype(jnp.bfloat16)
    b_fc_p = jnp.pad(params["b_fc"].reshape(1, O), ((0, 0), (0, Op - O))).astype(jnp.float32)
    return dict(layers=prepped_layers, w_fc=w_fc_p, b_fc=b_fc_p)


# ---------------------------------------------------------------------------
# Kernel 1: hoisted input projection  GI = X @ W_ih^T + b   (one big parallel GEMM)
# ---------------------------------------------------------------------------
def _proj_kernel(x_ref, w_ref, b_ref, o_ref):
    acc = jnp.dot(x_ref[...], w_ref[...], preferred_element_type=jnp.float32) + b_ref[...]
    o_ref[...] = acc.astype(o_ref.dtype)


def _proj(x3, w_p, b_p, Tc, vmem_limit):
    """x3: (T_pad, Bp, K) bf16; w_p: (K, 3Hp) bf16; b_p: (1, 3Hp) f32
       -> (T_pad, Bp, 3Hp) bf16 (time-major, ready for the recurrence)."""
    T_pad, Bp, K = x3.shape
    N = w_p.shape[1]
    Mb = Tc * Bp
    nM = T_pad // Tc
    x2 = x3.reshape(T_pad * Bp, K)                 # row-major bitcast, no data movement
    out = pl.pallas_call(
        _proj_kernel,
        out_shape=jax.ShapeDtypeStruct((T_pad * Bp, N), jnp.bfloat16),
        grid=(nM,),
        in_specs=[
            pl.BlockSpec((Mb, K), lambda m: (m, 0)),
            _resident_spec((K, N), lambda m: (0, 0)),
            _resident_spec((1, N), lambda m: (0, 0)),
        ],
        out_specs=pl.BlockSpec((Mb, N), lambda m: (m, 0)),
        compiler_params=pltpu.CompilerParams(
            dimension_semantics=("parallel",),
            vmem_limit_bytes=vmem_limit),
    )(x2, w_p, b_p)
    return out.reshape(T_pad, Bp, N)


# ---------------------------------------------------------------------------
# Kernel 2: sequential recurrence over time chunks (optionally fused with the FC)
# ---------------------------------------------------------------------------
def _gru_recurrence(gi, whh_p, bhn_p, T_valid, Tc, Bb, vmem_limit, wfc_p=None, bfc_p=None):
    """gi: (T_pad, Bp, 3Hp) bf16 time-major.  Returns (T_pad, Bp, Hp) bf16 hidden
       sequence, or (Bp, Op) f32 FC output when wfc_p/bfc_p are given."""
    T_pad, Bp, threeHp = gi.shape
    Hp = threeHp // 3
    nC = T_pad // Tc
    nB = Bp // Bb
    fuse_fc = wfc_p is not None

    def _chunk_steps(gi_ref, whh_b, bhn_b, h, c, hs_ref=None):
        # unrolled chunk loop: only the (Bb,Hp)@(Hp,3Hp) matmul is sequential work
        for s in range(Tc):
            gh = jnp.dot(h.astype(jnp.bfloat16), whh_b,
                         preferred_element_type=jnp.float32)
            gi_s = gi_ref[s].astype(jnp.float32)                      # (Bb, 3Hp)
            r = jax.nn.sigmoid(gi_s[:, 0:Hp] + gh[:, 0:Hp])
            z = jax.nn.sigmoid(gi_s[:, Hp:2 * Hp] + gh[:, Hp:2 * Hp])
            n = jnp.tanh(gi_s[:, 2 * Hp:] + r * (gh[:, 2 * Hp:] + bhn_b))
            h_new = (1.0 - z) * n + z * h
            if (nC - 1) * Tc + s >= T_valid:
                # only the tail of the last chunk can be a padded timestep: carry h
                h = jnp.where((c * Tc + s) < T_valid, h_new, h)
            else:
                h = h_new
            if hs_ref is not None:
                hs_ref[s] = h.astype(hs_ref.dtype)
        return h

    if fuse_fc:
        Op = wfc_p.shape[1]

        def kernel_fc(gi_ref, whh_ref, bhn_ref, wfc_ref, bfc_ref, out_ref, h_ref):
            c = pl.program_id(1)

            @pl.when(c == 0)
            def _init():
                h_ref[...] = jnp.zeros_like(h_ref)

            bhn_b = jnp.broadcast_to(bhn_ref[...], (Bb, Hp))          # hoisted broadcast
            h = _chunk_steps(gi_ref, whh_ref[...], bhn_b, h_ref[...], c)
            h_ref[...] = h

            @pl.when(c == nC - 1)
            def _finalize():                                          # fused Linear on h_T
                out_ref[...] = (jnp.dot(h.astype(jnp.bfloat16), wfc_ref[...],
                                        preferred_element_type=jnp.float32)
                                + bfc_ref[...])

        return pl.pallas_call(
            kernel_fc,
            out_shape=jax.ShapeDtypeStruct((Bp, Op), jnp.float32),
            grid=(nB, nC),
            in_specs=[
                pl.BlockSpec((Tc, Bb, threeHp), lambda b, c: (c, b, 0)),
                _resident_spec((Hp, threeHp), lambda b, c: (0, 0)),
                _resident_spec((1, Hp), lambda b, c: (0, 0)),
                _resident_spec((Hp, Op), lambda b, c: (0, 0)),
                _resident_spec((1, Op), lambda b, c: (0, 0)),
            ],
            out_specs=pl.BlockSpec((Bb, Op), lambda b, c: (b, 0)),
            scratch_shapes=[pltpu.VMEM((Bb, Hp), jnp.float32)],
            compiler_params=pltpu.CompilerParams(
                dimension_semantics=("parallel", "arbitrary"),
                vmem_limit_bytes=vmem_limit),
        )(gi, whh_p, bhn_p, wfc_p, bfc_p)

    # non-last layer: emit the full hidden sequence (bf16) for the next layer
    def kernel_seq(gi_ref, whh_ref, bhn_ref, hs_ref, h_ref):
        c = pl.program_id(1)

        @pl.when(c == 0)
        def _init():
            h_ref[...] = jnp.zeros_like(h_ref)

        bhn_b = jnp.broadcast_to(bhn_ref[...], (Bb, Hp))
        h = _chunk_steps(gi_ref, whh_ref[...], bhn_b, h_ref[...], c, hs_ref)
        h_ref[...] = h

    return pl.pallas_call(
        kernel_seq,
        out_shape=jax.ShapeDtypeStruct((T_pad, Bp, Hp), jnp.bfloat16),
        grid=(nB, nC),
        in_specs=[
            pl.BlockSpec((Tc, Bb, threeHp), lambda b, c: (c, b, 0)),
            _resident_spec((Hp, threeHp), lambda b, c: (0, 0)),
            _resident_spec((1, Hp), lambda b, c: (0, 0)),
        ],
        out_specs=pl.BlockSpec((Tc, Bb, Hp), lambda b, c: (c, b, 0)),
        scratch_shapes=[pltpu.VMEM((Bb, Hp), jnp.float32)],
        compiler_params=pltpu.CompilerParams(
            dimension_semantics=("parallel", "arbitrary"),
            vmem_limit_bytes=vmem_limit),
    )(gi, whh_p, bhn_p)


# ---------------------------------------------------------------------------
# Forward pass (equivalent of the PyTorch module); weights must be pre-prepared
# ---------------------------------------------------------------------------
def gru_forward(x, prepped, *, output_size, max_time_chunk=None):
    """x: (B, T, I) batch_first f32  ->  (B, output_size) f32."""
    B, T, I = x.shape
    layers = prepped["layers"]
    wfc_p, bfc_p = prepped["w_fc"], prepped["b_fc"]
    Hp, Op = wfc_p.shape

    plan = _plan(T, B, Hp, Op, max_time_chunk)
    Bp, Bb, Tc, T_pad, vlim = plan["Bp"], plan["Bb"], plan["Tc"], plan["T_pad"], plan["vmem_limit"]

    # pad + reorder + cast the raw input once (time-major, batch padded, bf16);
    # this replaces the old full-size pad pass over GI.
    x_t = jnp.transpose(x, (1, 0, 2)).astype(jnp.bfloat16)            # (T, B, I)
    x_t = jnp.pad(x_t, ((0, T_pad - T), (0, Bp - B), (0, 0)))          # (T_pad, Bp, I)

    seq = x_t
    n_layers = len(layers)
    for l, layer in enumerate(layers):
        gi = _proj(seq, layer["w_ih"], layer["b_gi"], Tc, vlim)        # (T_pad, Bp, 3Hp) bf16
        if l == n_layers - 1:
            out_p = _gru_recurrence(gi, layer["w_hh"], layer["b_hn"], T, Tc, Bb, vlim,
                                    wfc_p=wfc_p, bfc_p=bfc_p)
            return out_p[:B, :output_size]
        seq = _gru_recurrence(gi, layer["w_hh"], layer["b_hn"], T, Tc, Bb, vlim)

    raise AssertionError("num_layers must be >= 1")


# ---------------------------------------------------------------------------
# Deterministic parameter init (PyTorch-style uniform(-1/sqrt(H), 1/sqrt(H)))
# ---------------------------------------------------------------------------
def init_params(key, input_size, hidden_size, num_layers, output_size):
    k = 1.0 / math.sqrt(hidden_size)
    layers = []
    in_sz = input_size
    for _ in range(num_layers):
        key, k1, k2, k3, k4 = jax.random.split(key, 5)
        layers.append(dict(
            w_ih=jax.random.uniform(k1, (3 * hidden_size, in_sz), jnp.float32, -k, k),
            w_hh=jax.random.uniform(k2, (3 * hidden_size, hidden_size), jnp.float32, -k, k),
            b_ih=jax.random.uniform(k3, (3 * hidden_size,), jnp.float32, -k, k),
            b_hh=jax.random.uniform(k4, (3 * hidden_size,), jnp.float32, -k, k),
        ))
        in_sz = hidden_size
    key, k1, k2 = jax.random.split(key, 3)
    w_fc = jax.random.uniform(k1, (output_size, hidden_size), jnp.float32, -k, k)
    b_fc = jax.random.uniform(k2, (output_size,), jnp.float32, -k, k)
    return dict(gru_layers=layers, w_fc=w_fc, b_fc=b_fc)


# ---------------------------------------------------------------------------
# Pure-JAX f32 reference (mirrors torch.nn.GRU semantics) for correctness check
# ---------------------------------------------------------------------------
def gru_forward_ref(x_bti, params):
    x = jnp.transpose(x_bti, (1, 0, 2))
    B = x.shape[1]
    for layer in params["gru_layers"]:
        w_ih, w_hh = layer["w_ih"], layer["w_hh"]
        b_ih, b_hh = layer["b_ih"], layer["b_hh"]
        H = w_hh.shape[1]

        def step(h, x_t, w_ih=w_ih, w_hh=w_hh, b_ih=b_ih, b_hh=b_hh):
            gi = x_t @ w_ih.T + b_ih
            gh = h @ w_hh.T + b_hh
            i_r, i_z, i_n = jnp.split(gi, 3, axis=-1)
            h_r, h_z, h_n = jnp.split(gh, 3, axis=-1)
            r = jax.nn.sigmoid(i_r + h_r)
            z = jax.nn.sigmoid(i_z + h_z)
            n = jnp.tanh(i_n + r * h_n)
            h_new = (1.0 - z) * n + z * h
            return h_new, h_new

        h0 = jnp.zeros((B, H), jnp.float32)
        _, x = jax.lax.scan(step, h0, x)
    return x[-1] @ params["w_fc"].T + params["b_fc"]


# ---------------------------------------------------------------------------
if __name__ == "__main__":
    B, T = 2, 8
    input_size, hidden_size, num_layers, output_size = 4, 32, 1, 1

    key = jax.random.PRNGKey(0)
    key, pkey, xkey = jax.random.split(key, 3)
    params = init_params(pkey, input_size, hidden_size, num_layers, output_size)
    x = jax.random.normal(xkey, (B, T, input_size), jnp.float32)   # batch_first (B, T, I)

    _probe_single_buffer()                      # one-time, outside jit
    prepped = prepare_params(params)            # one-time weight prep, outside jit

    fwd = jax.jit(gru_forward, static_argnames=("output_size", "max_time_chunk"))
    out = jax.block_until_ready(fwd(x, prepped, output_size=output_size))
    ref = jax.block_until_ready(gru_forward_ref(x, params))
    assert out.shape == (B, output_size), out.shape
    # bf16 MXU operands / bf16 GI storage with f32 gate math -> relaxed tolerance vs f32 ref
    assert jnp.allclose(out, ref, rtol=5e-2, atol=5e-2), (out, ref)

    # exercise multi-layer, multi-chunk and tail-masked (T_pad > T) code paths
    params2 = init_params(pkey, input_size, hidden_size, 2, output_size)
    prepped2 = prepare_params(params2)
    out2 = jax.block_until_ready(
        fwd(x, prepped2, output_size=output_size, max_time_chunk=3))
    ref2 = jax.block_until_ready(gru_forward_ref(x, params2))
    assert jnp.allclose(out2, ref2, rtol=5e-2, atol=5e-2), (out2, ref2)

    print("KERNEL_OK")
</pallas_src>

<mosaic_0001>
module attributes {stable_mosaic.version = 11 : i64} {
  func.func @_probe_kernel(%arg0: i32, %arg1: memref<8x128xf32, #tpu.memory_space<vmem>>, %arg2: memref<8x128xf32, #tpu.memory_space<vmem>>) attributes {dimension_semantics = [#tpu.dimension_semantics<arbitrary>], iteration_bounds = array<i64: 2>, scalar_prefetch = 0 : i64, scratch_operands = 0 : i64, tpu.core_type = #tpu.core_type<tc>, window_params = [{pipeline_mode = #tpu.pipeline_mode<synchronous>, transform_indices = @transform_0, window_bounds = array<i64: 8, 128>}, {transform_indices = @transform_1, window_bounds = array<i64: 8, 128>}]} {
    %c0 = arith.constant 0 : index
    %c0_0 = arith.constant 0 : index
    %0 = vector.load %arg1[%c0, %c0_0] : memref<8x128xf32, #tpu.memory_space<vmem>>, vector<8x128xf32>
    %cst = arith.constant 1.000000e+00 : f32
    %1 = vector.broadcast %cst : f32 to vector<8x128xf32>
    %2 = arith.addf %0, %1 : vector<8x128xf32>
    %c0_1 = arith.constant 0 : index
    %c0_2 = arith.constant 0 : index
    %3 = vector.load %arg2[%c0_1, %c0_2] : memref<8x128xf32, #tpu.memory_space<vmem>>, vector<8x128xf32>
    tpu.vector_store %arg2[%c0_1, %c0_2], %2 {strides = array<i32>} : memref<8x128xf32, #tpu.memory_space<vmem>>, vector<8x128xf32>,
    return
  }
  func.func @transform_0(%arg0: i32) -> (i32, i32) {
    %c0_i32 = arith.constant 0 : i32
    %c0_i32_0 = arith.constant 0 : i32
    %c0_i32_1 = arith.constant 0 : i32
    return %c0_i32, %c0_i32_0 : i32, i32
  }
  func.func @transform_1(%arg0: i32) -> (i32, i32) {
    %c0_i32 = arith.constant 0 : i32
    %c0_i32_0 = arith.constant 0 : i32
    return %arg0, %c0_i32 : i32, i32
  }
}

module attributes {stable_mosaic.version = 11 : i64} {
  func.func @_proj_kernel(%arg0: i32, %arg1: memref<64x4xbf16, #tpu.memory_space<vmem>>, %arg2: memref<4x384xbf16, #tpu.memory_space<vmem>>, %arg3: memref<1x384xf32, #tpu.memory_space<vmem>>, %arg4: memref<64x384xbf16, #tpu.memory_space<vmem>>) attributes {dimension_semantics = [#tpu.dimension_semantics<parallel>], iteration_bounds = array<i64: 1>, scalar_prefetch = 0 : i64, scratch_operands = 0 : i64, tpu.core_type = #tpu.core_type<tc>, window_params = [{transform_indices = @transform_0, window_bounds = array<i64: 64, 4>}, {pipeline_mode = #tpu.pipeline_mode<synchronous>, transform_indices = @transform_1, window_bounds = array<i64: 4, 384>}, {pipeline_mode = #tpu.pipeline_mode<synchronous>, transform_indices = @transform_2, window_bounds = array<i64: 1, 384>}, {transform_indices = @transform_3, window_bounds = array<i64: 64, 384>}]} {
    %c0 = arith.constant 0 : index
    %c0_0 = arith.constant 0 : index
    %0 = vector.load %arg1[%c0, %c0_0] : memref<64x4xbf16, #tpu.memory_space<vmem>>, vector<64x4xbf16>
    %c0_1 = arith.constant 0 : index
    %c0_2 = arith.constant 0 : index
    %1 = vector.load %arg2[%c0_1, %c0_2] : memref<4x384xbf16, #tpu.memory_space<vmem>>, vector<4x384xbf16>
    %cst = arith.constant dense<0.000000e+00> : vector<64x384xf32>
    %2 = tpu.matmul %0, %1, %cst {dimension_numbers = #tpu.dot_dimension_numbers<[1], [0], [0], [1], [0, 0, 1, 1], [], []>} : vector<64x4xbf16>, vector<4x384xbf16>, vector<64x384xf32> -> vector<64x384xf32>
    %c0_3 = arith.constant 0 : index
    %c0_4 = arith.constant 0 : index
    %3 = vector.load %arg3[%c0_3, %c0_4] : memref<1x384xf32, #tpu.memory_space<vmem>>, vector<1x384xf32>
    %4 = vector.broadcast %3 : vector<1x384xf32> to vector<64x384xf32>
    %5 = arith.addf %2, %4 : vector<64x384xf32>
    %6 = arith.truncf %5 : vector<64x384xf32> to vector<64x384xbf16>
    %c0_5 = arith.constant 0 : index
    %c0_6 = arith.constant 0 : index
    %7 = vector.load %arg4[%c0_5, %c0_6] : memref<64x384xbf16, #tpu.memory_space<vmem>>, vector<64x384xbf16>
    tpu.vector_store %arg4[%c0_5, %c0_6], %6 {strides = array<i32>} : memref<64x384xbf16, #tpu.memory_space<vmem>>, vector<64x384xbf16>,
    return
  }
  func.func @transform_0(%arg0: i32) -> (i32, i32) {
    %c0_i32 = arith.constant 0 : i32
    %c0_i32_0 = arith.constant 0 : i32
    return %arg0, %c0_i32 : i32, i32
  }
  func.func @transform_1(%arg0: i32) -> (i32, i32) {
    %c0_i32 = arith.constant 0 : i32
    %c0_i32_0 = arith.constant 0 : i32
    %c0_i32_1 = arith.constant 0 : i32
    return %c0_i32, %c0_i32_0 : i32, i32
  }
  func.func @transform_2(%arg0: i32) -> (i32, i32) {
    %c0_i32 = arith.constant 0 : i32
    %c0_i32_0 = arith.constant 0 : i32
    %c0_i32_1 = arith.constant 0 : i32
    return %c0_i32, %c0_i32_0 : i32, i32
  }
  func.func @transform_3(%arg0: i32) -> (i32, i32) {
    %c0_i32 = arith.constant 0 : i32
    %c0_i32_0 = arith.constant 0 : i32
    return %arg0, %c0_i32 : i32, i32
  }
}

module attributes {stable_mosaic.version = 11 : i64} {
  func.func @kernel_fc(%arg0: i32, %arg1: i32, %arg2: memref<8x8x384xbf16, #tpu.memory_space<vmem>>, %arg3: memref<128x384xbf16, #tpu.memory_space<vmem>>, %arg4: memref<1x128xf32, #tpu.memory_space<vmem>>, %arg5: memref<128x128xbf16, #tpu.memory_space<vmem>>, %arg6: memref<1x128xf32, #tpu.memory_space<vmem>>, %arg7: memref<8x128xf32, #tpu.memory_space<vmem>>, %arg8: memref<8x128xf32, #tpu.memory_space<vmem>>) attributes {dimension_semantics = [#tpu.dimension_semantics<parallel>, #tpu.dimension_semantics<arbitrary>], iteration_bounds = array<i64: 1, 1>, scalar_prefetch = 0 : i64, scratch_operands = 1 : i64, tpu.core_type = #tpu.core_type<tc>, window_params = [{transform_indices = @transform_0, window_bounds = array<i64: 8, 8, 384>}, {pipeline_mode = #tpu.pipeline_mode<synchronous>, transform_indices = @transform_1, window_bounds = array<i64: 128, 384>}, {pipeline_mode = #tpu.pipeline_mode<synchronous>, transform_indices = @transform_2, window_bounds = array<i64: 1, 128>}, {pipeline_mode = #tpu.pipeline_mode<synchronous>, transform_indices = @transform_3, window_bounds = array<i64: 128, 128>}, {pipeline_mode = #tpu.pipeline_mode<synchronous>, transform_indices = @transform_4, window_bounds = array<i64: 1, 128>}, {transform_indices = @transform_5, window_bounds = array<i64: 8, 128>}]} {
    %c0_i32 = arith.constant 0 : i32
    %0 = arith.cmpi eq, %arg1, %c0_i32 : i32
    %1 = arith.extui %0 : i1 to i32
    %c0_i32_0 = arith.constant 0 : i32
    %2 = arith.cmpi ne, %1, %c0_i32_0 : i32
    scf.if %2 {
      %cst_58 = arith.constant 0.000000e+00 : f32
      %268 = vector.broadcast %cst_58 : f32 to vector<8x128xf32>
      %c0_59 = arith.constant 0 : index
      %c0_60 = arith.constant 0 : index
      %269 = vector.load %arg8[%c0_59, %c0_60] : memref<8x128xf32, #tpu.memory_space<vmem>>, vector<8x128xf32>
      tpu.vector_store %arg8[%c0_59, %c0_60], %268 {strides = array<i32>} : memref<8x128xf32, #tpu.memory_space<vmem>>, vector<8x128xf32>,
    } else {
    }
    %c0 = arith.constant 0 : index
    %c0_1 = arith.constant 0 : index
    %3 = vector.load %arg4[%c0, %c0_1] : memref<1x128xf32, #tpu.memory_space<vmem>>, vector<1x128xf32>
    %4 = vector.shape_cast %3 : vector<1x128xf32> to vector<1x128xf32>
    %5 = vector.broadcast %4 : vector<1x128xf32> to vector<8x128xf32>
    %c0_2 = arith.constant 0 : index
    %c0_3 = arith.constant 0 : index
    %6 = vector.load %arg3[%c0_2, %c0_3] : memref<128x384xbf16, #tpu.memory_space<vmem>>, vector<128x384xbf16>
    %c0_4 = arith.constant 0 : index
    %c0_5 = arith.constant 0 : index
    %7 = vector.load %arg8[%c0_4, %c0_5] : memref<8x128xf32, #tpu.memory_space<vmem>>, vector<8x128xf32>
    %8 = arith.truncf %7 : vector<8x128xf32> to vector<8x128xbf16>
    %cst = arith.constant dense<0.000000e+00> : vector<8x384xf32>
    %9 = tpu.matmul %8, %6, %cst {dimension_numbers = #tpu.dot_dimension_numbers<[1], [0], [0], [1], [0, 0, 1, 1], [], []>} : vector<8x128xbf16>, vector<128x384xbf16>, vector<8x384xf32> -> vector<8x384xf32>
    %c0_6 = arith.constant 0 : index
    %c0_7 = arith.constant 0 : index
    %c0_8 = arith.constant 0 : index
    %10 = vector.load %arg2[%c0_6, %c0_7, %c0_8] : memref<8x8x384xbf16, #tpu.memory_space<vmem>>, vector<1x8x384xbf16>
    %11 = vector.shape_cast %10 : vector<1x8x384xbf16> to vector<8x384xbf16>
    %12 = arith.extf %11 : vector<8x384xbf16> to vector<8x384xf32>
    %13 = vector.extract_strided_slice %12 {offsets = [0, 0], sizes = [8, 128], strides = [1, 1]} : vector<8x384xf32> to vector<8x128xf32>
    %14 = vector.extract_strided_slice %9 {offsets = [0, 0], sizes = [8, 128], strides = [1, 1]} : vector<8x384xf32> to vector<8x128xf32>
    %15 = arith.addf %13, %14 : vector<8x128xf32>
    %16 = arith.negf %15 : vector<8x128xf32>
    %17 = math.exp %16 : vector<8x128xf32>
    %cst_9 = arith.constant 1.000000e+00 : f32
    %18 = vector.broadcast %cst_9 : f32 to vector<8x128xf32>
    %19 = arith.addf %18, %17 : vector<8x128xf32>
    %20 = arith.divf %18, %19 : vector<8x128xf32>
    %21 = vector.extract_strided_slice %12 {offsets = [0, 128], sizes = [8, 128], strides = [1, 1]} : vector<8x384xf32> to vector<8x128xf32>
    %22 = vector.extract_strided_slice %9 {offsets = [0, 128], sizes = [8, 128], strides = [1, 1]} : vector<8x384xf32> to vector<8x128xf32>
    %23 = arith.addf %21, %22 : vector<8x128xf32>
    %24 = arith.negf %23 : vector<8x128xf32>
    %25 = math.exp %24 : vector<8x128xf32>
    %cst_10 = arith.constant 1.000000e+00 : f32
    %26 = vector.broadcast %cst_10 : f32 to vector<8x128xf32>
    %27 = arith.addf %26, %25 : vector<8x128xf32>
    %28 = arith.divf %26, %27 : vector<8x128xf32>
    %29 = vector.extract_strided_slice %12 {offsets = [0, 256], sizes = [8, 128], strides = [1, 1]} : vector<8x384xf32> to vector<8x128xf32>
    %30 = vector.extract_strided_slice %9 {offsets = [0, 256], sizes = [8, 128], strides = [1, 1]} : vector<8x384xf32> to vector<8x128xf32>
    %31 = arith.addf %30, %5 : vector<8x128xf32>
    %32 = arith.mulf %20, %31 : vector<8x128xf32>
    %33 = arith.addf %29, %32 : vector<8x128xf32>
    %34 = math.tanh %33 : vector<8x128xf32>
    %cst_11 = arith.constant 1.000000e+00 : f32
    %35 = vector.broadcast %cst_11 : f32 to vector<8x128xf32>
    %36 = arith.subf %35, %28 : vector<8x128xf32>
    %37 = arith.mulf %36, %34 : vector<8x128xf32>
    %38 = arith.mulf %28, %7 : vector<8x128xf32>
    %39 = arith.addf %37, %38 : vector<8x128xf32>
    %40 = arith.truncf %39 : vector<8x128xf32> to vector<8x128xbf16>
    %cst_12 = arith.constant dense<0.000000e+00> : vector<8x384xf32>
    %41 = tpu.matmul %40, %6, %cst_12 {dimension_numbers = #tpu.dot_dimension_numbers<[1], [0], [0], [1], [0, 0, 1, 1], [], []>} : vector<8x128xbf16>, vector<128x384xbf16>, vector<8x384xf32> -> vector<8x384xf32>
    %c1 = arith.constant 1 : index
    %c0_13 = arith.constant 0 : index
    %c0_14 = arith.constant 0 : index
    %42 = vector.load %arg2[%c1, %c0_13, %c0_14] : memref<8x8x384xbf16, #tpu.memory_space<vmem>>, vector<1x8x384xbf16>
    %43 = vector.shape_cast %42 : vector<1x8x384xbf16> to vector<8x384xbf16>
    %44 = arith.extf %43 : vector<8x384xbf16> to vector<8x384xf32>
    %45 = vector.extract_strided_slice %44 {offsets = [0, 0], sizes = [8, 128], strides = [1, 1]} : vector<8x384xf32> to vector<8x128xf32>
    %46 = vector.extract_strided_slice %41 {offsets = [0, 0], sizes = [8, 128], strides = [1, 1]} : vector<8x384xf32> to vector<8x128xf32>
    %47 = arith.addf %45, %46 : vector<8x128xf32>
    %48 = arith.negf %47 : vector<8x128xf32>
    %49 = math.exp %48 : vector<8x128xf32>
    %cst_15 = arith.constant 1.000000e+00 : f32
    %50 = vector.broadcast %cst_15 : f32 to vector<8x128xf32>
    %51 = arith.addf %50, %49 : vector<8x128xf32>
    %52 = arith.divf %50, %51 : vector<8x128xf32>
    %53 = vector.extract_strided_slice %44 {offsets = [0, 128], sizes = [8, 128], strides = [1, 1]} : vector<8x384xf32> to vector<8x128xf32>
    %54 = vector.extract_strided_slice %41 {offsets = [0, 128], sizes = [8, 128], strides = [1, 1]} : vector<8x384xf32> to vector<8x128xf32>
    %55 = arith.addf %53, %54 : vector<8x128xf32>
    %56 = arith.negf %55 : vector<8x128xf32>
    %57 = math.exp %56 : vector<8x128xf32>
    %cst_16 = arith.constant 1.000000e+00 : f32
    %58 = vector.broadcast %cst_16 : f32 to vector<8x128xf32>
    %59 = arith.addf %58, %57 : vector<8x128xf32>
    %60 = arith.divf %58, %59 : vector<8x128xf32>
    %61 = vector.extract_strided_slice %44 {offsets = [0, 256], sizes = [8, 128], strides = [1, 1]} : vector<8x384xf32> to vector<8x128xf32>
    %62 = vector.extract_strided_slice %41 {offsets = [0, 256], sizes = [8, 128], strides = [1, 1]} : vector<8x384xf32> to vector<8x128xf32>
    %63 = arith.addf %62, %5 : vector<8x128xf32>
    %64 = arith.mulf %52, %63 : vector<8x128xf32>
    %65 = arith.addf %61, %64 : vector<8x128xf32>
    %66 = math.tanh %65 : vector<8x128xf32>
    %cst_17 = arith.constant 1.000000e+00 : f32
    %67 = vector.broadcast %cst_17 : f32 to vector<8x128xf32>
    %68 = arith.subf %67, %60 : vector<8x128xf32>
    %69 = arith.mulf %68, %66 : vector<8x128xf32>
    %70 = arith.mulf %60, %39 : vector<8x128xf32>
    %71 = arith.addf %69, %70 : vector<8x128xf32>
    %72 = arith.truncf %71 : vector<8x128xf32> to vector<8x128xbf16>
    %cst_18 = arith.constant dense<0.000000e+00> : vector<8x384xf32>
    %73 = tpu.matmul %72, %6, %cst_18 {dimension_numbers = #tpu.dot_dimension_numbers<[1], [0], [0], [1], [0, 0, 1, 1], [], []>} : vector<8x128xbf16>, vector<128x384xbf16>, vector<8x384xf32> -> vector<8x384xf32>
    %c2 = arith.constant 2 : index
    %c0_19 = arith.constant 0 : index
    %c0_20 = arith.constant 0 : index
    %74 = vector.load %arg2[%c2, %c0_19, %c0_20] : memref<8x8x384xbf16, #tpu.memory_space<vmem>>, vector<1x8x384xbf16>
    %75 = vector.shape_cast %74 : vector<1x8x384xbf16> to vector<8x384xbf16>
    %76 = arith.extf %75 : vector<8x384xbf16> to vector<8x384xf32>
    %77 = vector.extract_strided_slice %76 {offsets = [0, 0], sizes = [8, 128], strides = [1, 1]} : vector<8x384xf32> to vector<8x128xf32>
    %78 = vector.extract_strided_slice %73 {offsets = [0, 0], sizes = [8, 128], strides = [1, 1]} : vector<8x384xf32> to vector<8x128xf32>
    %79 = arith.addf %77, %78 : vector<8x128xf32>
    %80 = arith.negf %79 : vector<8x128xf32>
    %81 = math.exp %80 : vector<8x128xf32>
    %cst_21 = arith.constant 1.000000e+00 : f32
    %82 = vector.broadcast %cst_21 : f32 to vector<8x128xf32>
    %83 = arith.addf %82, %81 : vector<8x128xf32>
    %84 = arith.divf %82, %83 : vector<8x128xf32>
    %85 = vector.extract_strided_slice %76 {offsets = [0, 128], sizes = [8, 128], strides = [1, 1]} : vector<8x384xf32> to vector<8x128xf32>
    %86 = vector.extract_strided_slice %73 {offsets = [0, 128], sizes = [8, 128], strides = [1, 1]} : vector<8x384xf32> to vector<8x128xf32>
    %87 = arith.addf %85, %86 : vector<8x128xf32>
    %88 = arith.negf %87 : vector<8x128xf32>
    %89 = math.exp %88 : vector<8x128xf32>
    %cst_22 = arith.constant 1.000000e+00 : f32
    %90 = vector.broadcast %cst_22 : f32 to vector<8x128xf32>
    %91 = arith.addf %90, %89 : vector<8x128xf32>
    %92 = arith.divf %90, %91 : vector<8x128xf32>
    %93 = vector.extract_strided_slice %76 {offsets = [0, 256], sizes = [8, 128], strides = [1, 1]} : vector<8x384xf32> to vector<8x128xf32>
    %94 = vector.extract_strided_slice %73 {offsets = [0, 256], sizes = [8, 128], strides = [1, 1]} : vector<8x384xf32> to vector<8x128xf32>
    %95 = arith.addf %94, %5 : vector<8x128xf32>
    %96 = arith.mulf %84, %95 : vector<8x128xf32>
    %97 = arith.addf %93, %96 : vector<8x128xf32>
    %98 = math.tanh %97 : vector<8x128xf32>
    %cst_23 = arith.constant 1.000000e+00 : f32
    %99 = vector.broadcast %cst_23 : f32 to vector<8x128xf32>
    %100 = arith.subf %99, %92 : vector<8x128xf32>
    %101 = arith.mulf %100, %98 : vector<8x128xf32>
    %102 = arith.mulf %92, %71 : vector<8x128xf32>
    %103 = arith.addf %101, %102 : vector<8x128xf32>
    %104 = arith.truncf %103 : vector<8x128xf32> to vector<8x128xbf16>
    %cst_24 = arith.constant dense<0.000000e+00> : vector<8x384xf32>
    %105 = tpu.matmul %104, %6, %cst_24 {dimension_numbers = #tpu.dot_dimension_numbers<[1], [0], [0], [1], [0, 0, 1, 1], [], []>} : vector<8x128xbf16>, vector<128x384xbf16>, vector<8x384xf32> -> vector<8x384xf32>
    %c3 = arith.constant 3 : index
    %c0_25 = arith.constant 0 : index
    %c0_26 = arith.constant 0 : index
    %106 = vector.load %arg2[%c3, %c0_25, %c0_26] : memref<8x8x384xbf16, #tpu.memory_space<vmem>>, vector<1x8x384xbf16>
    %107 = vector.shape_cast %106 : vector<1x8x384xbf16> to vector<8x384xbf16>
    %108 = arith.extf %107 : vector<8x384xbf16> to vector<8x384xf32>
    %109 = vector.extract_strided_slice %108 {offsets = [0, 0], sizes = [8, 128], strides = [1, 1]} : vector<8x384xf32> to vector<8x128xf32>
    %110 = vector.extract_strided_slice %105 {offsets = [0, 0], sizes = [8, 128], strides = [1, 1]} : vector<8x384xf32> to vector<8x128xf32>
    %111 = arith.addf %109, %110 : vector<8x128xf32>
    %112 = arith.negf %111 : vector<8x128xf32>
    %113 = math.exp %112 : vector<8x128xf32>
    %cst_27 = arith.constant 1.000000e+00 : f32
    %114 = vector.broadcast %cst_27 : f32 to vector<8x128xf32>
    %115 = arith.addf %114, %113 : vector<8x128xf32>
    %116 = arith.divf %114, %115 : vector<8x128xf32>
    %117 = vector.extract_strided_slice %108 {offsets = [0, 128], sizes = [8, 128], strides = [1, 1]} : vector<8x384xf32> to vector<8x128xf32>
    %118 = vector.extract_strided_slice %105 {offsets = [0, 128], sizes = [8, 128], strides = [1, 1]} : vector<8x384xf32> to vector<8x128xf32>
    %119 = arith.addf %117, %118 : vector<8x128xf32>
    %120 = arith.negf %119 : vector<8x128xf32>
    %121 = math.exp %120 : vector<8x128xf32>
    %cst_28 = arith.constant 1.000000e+00 : f32
    %122 = vector.broadcast %cst_28 : f32 to vector<8x128xf32>
    %123 = arith.addf %122, %121 : vector<8x128xf32>
    %124 = arith.divf %122, %123 : vector<8x128xf32>
    %125 = vector.extract_strided_slice %108 {offsets = [0, 256], sizes = [8, 128], strides = [1, 1]} : vector<8x384xf32> to vector<8x128xf32>
    %126 = vector.extract_strided_slice %105 {offsets = [0, 256], sizes = [8, 128], strides = [1, 1]} : vector<8x384xf32> to vector<8x128xf32>
    %127 = arith.addf %126, %5 : vector<8x128xf32>
    %128 = arith.mulf %116, %127 : vector<8x128xf32>
    %129 = arith.addf %125, %128 : vector<8x128xf32>
    %130 = math.tanh %129 : vector<8x128xf32>
    %cst_29 = arith.constant 1.000000e+00 : f32
    %131 = vector.broadcast %cst_29 : f32 to vector<8x128xf32>
    %132 = arith.subf %131, %124 : vector<8x128xf32>
    %133 = arith.mulf %132, %130 : vector<8x128xf32>
    %134 = arith.mulf %124, %103 : vector<8x128xf32>
    %135 = arith.addf %133, %134 : vector<8x128xf32>
    %136 = arith.truncf %135 : vector<8x128xf32> to vector<8x128xbf16>
    %cst_30 = arith.constant dense<0.000000e+00> : vector<8x384xf32>
    %137 = tpu.matmul %136, %6, %cst_30 {dimension_numbers = #tpu.dot_dimension_numbers<[1], [0], [0], [1], [0, 0, 1, 1], [], []>} : vector<8x128xbf16>, vector<128x384xbf16>, vector<8x384xf32> -> vector<8x384xf32>
    %c4 = arith.constant 4 : index
    %c0_31 = arith.constant 0 : index
    %c0_32 = arith.constant 0 : index
    %138 = vector.load %arg2[%c4, %c0_31, %c0_32] : memref<8x8x384xbf16, #tpu.memory_space<vmem>>, vector<1x8x384xbf16>
    %139 = vector.shape_cast %138 : vector<1x8x384xbf16> to vector<8x384xbf16>
    %140 = arith.extf %139 : vector<8x384xbf16> to vector<8x384xf32>
    %141 = vector.extract_strided_slice %140 {offsets = [0, 0], sizes = [8, 128], strides = [1, 1]} : vector<8x384xf32> to vector<8x128xf32>
    %142 = vector.extract_strided_slice %137 {offsets = [0, 0], sizes = [8, 128], strides = [1, 1]} : vector<8x384xf32> to vector<8x128xf32>
    %143 = arith.addf %141, %142 : vector<8x128xf32>
    %144 = arith.negf %143 : vector<8x128xf32>
    %145 = math.exp %144 : vector<8x128xf32>
    %cst_33 = arith.constant 1.000000e+00 : f32
    %146 = vector.broadcast %cst_33 : f32 to vector<8x128xf32>
    %147 = arith.addf %146, %145 : vector<8x128xf32>
    %148 = arith.divf %146, %147 : vector<8x128xf32>
    %149 = vector.extract_strided_slice %140 {offsets = [0, 128], sizes = [8, 128], strides = [1, 1]} : vector<8x384xf32> to vector<8x128xf32>
    %150 = vector.extract_strided_slice %137 {offsets = [0, 128], sizes = [8, 128], strides = [1, 1]} : vector<8x384xf32> to vector<8x128xf32>
    %151 = arith.addf %149, %150 : vector<8x128xf32>
    %152 = arith.negf %151 : vector<8x128xf32>
    %153 = math.exp %152 : vector<8x128xf32>
    %cst_34 = arith.constant 1.000000e+00 : f32
    %154 = vector.broadcast %cst_34 : f32 to vector<8x128xf32>
    %155 = arith.addf %154, %153 : vector<8x128xf32>
    %156 = arith.divf %154, %155 : vector<8x128xf32>
    %157 = vector.extract_strided_slice %140 {offsets = [0, 256], sizes = [8, 128], strides = [1, 1]} : vector<8x384xf32> to vector<8x128xf32>
    %158 = vector.extract_strided_slice %137 {offsets = [0, 256], sizes = [8, 128], strides = [1, 1]} : vector<8x384xf32> to vector<8x128xf32>
    %159 = arith.addf %158, %5 : vector<8x128xf32>
    %160 = arith.mulf %148, %159 : vector<8x128xf32>
    %161 = arith.addf %157, %160 : vector<8x128xf32>
    %162 = math.tanh %161 : vector<8x128xf32>
    %cst_35 = arith.constant 1.000000e+00 : f32
    %163 = vector.broadcast %cst_35 : f32 to vector<8x128xf32>
    %164 = arith.subf %163, %156 : vector<8x128xf32>
    %165 = arith.mulf %164, %162 : vector<8x128xf32>
    %166 = arith.mulf %156, %135 : vector<8x128xf32>
    %167 = arith.addf %165, %166 : vector<8x128xf32>
    %168 = arith.truncf %167 : vector<8x128xf32> to vector<8x128xbf16>
    %cst_36 = arith.constant dense<0.000000e+00> : vector<8x384xf32>
    %169 = tpu.matmul %168, %6, %cst_36 {dimension_numbers = #tpu.dot_dimension_numbers<[1], [0], [0], [1], [0, 0, 1, 1], [], []>} : vector<8x128xbf16>, vector<128x384xbf16>, vector<8x384xf32> -> vector<8x384xf32>
    %c5 = arith.constant 5 : index
    %c0_37 = arith.constant 0 : index
    %c0_38 = arith.constant 0 : index
    %170 = vector.load %arg2[%c5, %c0_37, %c0_38] : memref<8x8x384xbf16, #tpu.memory_space<vmem>>, vector<1x8x384xbf16>
    %171 = vector.shape_cast %170 : vector<1x8x384xbf16> to vector<8x384xbf16>
    %172 = arith.extf %171 : vector<8x384xbf16> to vector<8x384xf32>
    %173 = vector.extract_strided_slice %172 {offsets = [0, 0], sizes = [8, 128], strides = [1, 1]} : vector<8x384xf32> to vector<8x128xf32>
    %174 = vector.extract_strided_slice %169 {offsets = [0, 0], sizes = [8, 128], strides = [1, 1]} : vector<8x384xf32> to vector<8x128xf32>
    %175 = arith.addf %173, %174 : vector<8x128xf32>
    %176 = arith.negf %175 : vector<8x128xf32>
    %177 = math.exp %176 : vector<8x128xf32>
    %cst_39 = arith.constant 1.000000e+00 : f32
    %178 = vector.broadcast %cst_39 : f32 to vector<8x128xf32>
    %179 = arith.addf %178, %177 : vector<8x128xf32>
    %180 = arith.divf %178, %179 : vector<8x128xf32>
    %181 = vector.extract_strided_slice %172 {offsets = [0, 128], sizes = [8, 128], strides = [1, 1]} : vector<8x384xf32> to vector<8x128xf32>
    %182 = vector.extract_strided_slice %169 {offsets = [0, 128], sizes = [8, 128], strides = [1, 1]} : vector<8x384xf32> to vector<8x128xf32>
    %183 = arith.addf %181, %182 : vector<8x128xf32>
    %184 = arith.negf %183 : vector<8x128xf32>
    %185 = math.exp %184 : vector<8x128xf32>
    %cst_40 = arith.constant 1.000000e+00 : f32
    %186 = vector.broadcast %cst_40 : f32 to vector<8x128xf32>
    %187 = arith.addf %186, %185 : vector<8x128xf32>
    %188 = arith.divf %186, %187 : vector<8x128xf32>
    %189 = vector.extract_strided_slice %172 {offsets = [0, 256], sizes = [8, 128], strides = [1, 1]} : vector<8x384xf32> to vector<8x128xf32>
    %190 = vector.extract_strided_slice %169 {offsets = [0, 256], sizes = [8, 128], strides = [1, 1]} : vector<8x384xf32> to vector<8x128xf32>
    %191 = arith.addf %190, %5 : vector<8x128xf32>
    %192 = arith.mulf %180, %191 : vector<8x128xf32>
    %193 = arith.addf %189, %192 : vector<8x128xf32>
    %194 = math.tanh %193 : vector<8x128xf32>
    %cst_41 = arith.constant 1.000000e+00 : f32
    %195 = vector.broadcast %cst_41 : f32 to vector<8x128xf32>
    %196 = arith.subf %195, %188 : vector<8x128xf32>
    %197 = arith.mulf %196, %194 : vector<8x128xf32>
    %198 = arith.mulf %188, %167 : vector<8x128xf32>
    %199 = arith.addf %197, %198 : vector<8x128xf32>
    %200 = arith.truncf %199 : vector<8x128xf32> to vector<8x128xbf16>
    %cst_42 = arith.constant dense<0.000000e+00> : vector<8x384xf32>
    %201 = tpu.matmul %200, %6, %cst_42 {dimension_numbers = #tpu.dot_dimension_numbers<[1], [0], [0], [1], [0, 0, 1, 1], [], []>} : vector<8x128xbf16>, vector<128x384xbf16>, vector<8x384xf32> -> vector<8x384xf32>
    %c6 = arith.constant 6 : index
    %c0_43 = arith.constant 0 : index
    %c0_44 = arith.constant 0 : index
    %202 = vector.load %arg2[%c6, %c0_43, %c0_44] : memref<8x8x384xbf16, #tpu.memory_space<vmem>>, vector<1x8x384xbf16>
    %203 = vector.shape_cast %202 : vector<1x8x384xbf16> to vector<8x384xbf16>
    %204 = arith.extf %203 : vector<8x384xbf16> to vector<8x384xf32>
    %205 = vector.extract_strided_slice %204 {offsets = [0, 0], sizes = [8, 128], strides = [1, 1]} : vector<8x384xf32> to vector<8x128xf32>
    %206 = vector.extract_strided_slice %201 {offsets = [0, 0], sizes = [8, 128], strides = [1, 1]} : vector<8x384xf32> to vector<8x128xf32>
    %207 = arith.addf %205, %206 : vector<8x128xf32>
    %208 = arith.negf %207 : vector<8x128xf32>
    %209 = math.exp %208 : vector<8x128xf32>
    %cst_45 = arith.constant 1.000000e+00 : f32
    %210 = vector.broadcast %cst_45 : f32 to vector<8x128xf32>
    %211 = arith.addf %210, %209 : vector<8x128xf32>
    %212 = arith.divf %210, %211 : vector<8x128xf32>
    %213 = vector.extract_strided_slice %204 {offsets = [0, 128], sizes = [8, 128], strides = [1, 1]} : vector<8x384xf32> to vector<8x128xf32>
    %214 = vector.extract_strided_slice %201 {offsets = [0, 128], sizes = [8, 128], strides = [1, 1]} : vector<8x384xf32> to vector<8x128xf32>
    %215 = arith.addf %213, %214 : vector<8x128xf32>
    %216 = arith.negf %215 : vector<8x128xf32>
    %217 = math.exp %216 : vector<8x128xf32>
    %cst_46 = arith.constant 1.000000e+00 : f32
    %218 = vector.broadcast %cst_46 : f32 to vector<8x128xf32>
    %219 = arith.addf %218, %217 : vector<8x128xf32>
    %220 = arith.divf %218, %219 : vector<8x128xf32>
    %221 = vector.extract_strided_slice %204 {offsets = [0, 256], sizes = [8, 128], strides = [1, 1]} : vector<8x384xf32> to vector<8x128xf32>
    %222 = vector.extract_strided_slice %201 {offsets = [0, 256], sizes = [8, 128], strides = [1, 1]} : vector<8x384xf32> to vector<8x128xf32>
    %223 = arith.addf %222, %5 : vector<8x128xf32>
    %224 = arith.mulf %212, %223 : vector<8x128xf32>
    %225 = arith.addf %221, %224 : vector<8x128xf32>
    %226 = math.tanh %225 : vector<8x128xf32>
    %cst_47 = arith.constant 1.000000e+00 : f32
    %227 = vector.broadcast %cst_47 : f32 to vector<8x128xf32>
    %228 = arith.subf %227, %220 : vector<8x128xf32>
    %229 = arith.mulf %228, %226 : vector<8x128xf32>
    %230 = arith.mulf %220, %199 : vector<8x128xf32>
    %231 = arith.addf %229, %230 : vector<8x128xf32>
    %232 = arith.truncf %231 : vector<8x128xf32> to vector<8x128xbf16>
    %cst_48 = arith.constant dense<0.000000e+00> : vector<8x384xf32>
    %233 = tpu.matmul %232, %6, %cst_48 {dimension_numbers = #tpu.dot_dimension_numbers<[1], [0], [0], [1], [0, 0, 1, 1], [], []>} : vector<8x128xbf16>, vector<128x384xbf16>, vector<8x384xf32> -> vector<8x384xf32>
    %c7 = arith.constant 7 : index
    %c0_49 = arith.constant 0 : index
    %c0_50 = arith.constant 0 : index
    %234 = vector.load %arg2[%c7, %c0_49, %c0_50] : memref<8x8x384xbf16, #tpu.memory_space<vmem>>, vector<1x8x384xbf16>
    %235 = vector.shape_cast %234 : vector<1x8x384xbf16> to vector<8x384xbf16>
    %236 = arith.extf %235 : vector<8x384xbf16> to vector<8x384xf32>
    %237 = vector.extract_strided_slice %236 {offsets = [0, 0], sizes = [8, 128], strides = [1, 1]} : vector<8x384xf32> to vector<8x128xf32>
    %238 = vector.extract_strided_slice %233 {offsets = [0, 0], sizes = [8, 128], strides = [1, 1]} : vector<8x384xf32> to vector<8x128xf32>
    %239 = arith.addf %237, %238 : vector<8x128xf32>
    %240 = arith.negf %239 : vector<8x128xf32>
    %241 = math.exp %240 : vector<8x128xf32>
    %cst_51 = arith.constant 1.000000e+00 : f32
    %242 = vector.broadcast %cst_51 : f32 to vector<8x128xf32>
    %243 = arith.addf %242, %241 : vector<8x128xf32>
    %244 = arith.divf %242, %243 : vector<8x128xf32>
    %245 = vector.extract_strided_slice %236 {offsets = [0, 128], sizes = [8, 128], strides = [1, 1]} : vector<8x384xf32> to vector<8x128xf32>
    %246 = vector.extract_strided_slice %233 {offsets = [0, 128], sizes = [8, 128], strides = [1, 1]} : vector<8x384xf32> to vector<8x128xf32>
    %247 = arith.addf %245, %246 : vector<8x128xf32>
    %248 = arith.negf %247 : vector<8x128xf32>
    %249 = math.exp %248 : vector<8x128xf32>
    %cst_52 = arith.constant 1.000000e+00 : f32
    %250 = vector.broadcast %cst_52 : f32 to vector<8x128xf32>
    %251 = arith.addf %250, %249 : vector<8x128xf32>
    %252 = arith.divf %250, %251 : vector<8x128xf32>
    %253 = vector.extract_strided_slice %236 {offsets = [0, 256], sizes = [8, 128], strides = [1, 1]} : vector<8x384xf32> to vector<8x128xf32>
    %254 = vector.extract_strided_slice %233 {offsets = [0, 256], sizes = [8, 128], strides = [1, 1]} : vector<8x384xf32> to vector<8x128xf32>
    %255 = arith.addf %254, %5 : vector<8x128xf32>
    %256 = arith.mulf %244, %255 : vector<8x128xf32>
    %257 = arith.addf %253, %256 : vector<8x128xf32>
    %258 = math.tanh %257 : vector<8x128xf32>
    %cst_53 = arith.constant 1.000000e+00 : f32
    %259 = vector.broadcast %cst_53 : f32 to vector<8x128xf32>
    %260 = arith.subf %259, %252 : vector<8x128xf32>
    %261 = arith.mulf %260, %258 : vector<8x128xf32>
    %262 = arith.mulf %252, %231 : vector<8x128xf32>
    %263 = arith.addf %261, %262 : vector<8x128xf32>
    %c0_54 = arith.constant 0 : index
    %c0_55 = arith.constant 0 : index
    %264 = vector.load %arg8[%c0_54, %c0_55] : memref<8x128xf32, #tpu.memory_space<vmem>>, vector<8x128xf32>
    tpu.vector_store %arg8[%c0_54, %c0_55], %263 {strides = array<i32>} : memref<8x128xf32, #tpu.memory_space<vmem>>, vector<8x128xf32>,
    %c0_i32_56 = arith.constant 0 : i32
    %265 = arith.cmpi eq, %arg1, %c0_i32_56 : i32
    %266 = arith.extui %265 : i1 to i32
    %c0_i32_57 = arith.constant 0 : i32
    %267 = arith.cmpi ne, %266, %c0_i32_57 : i32
    scf.if %267 {
      %268 = arith.truncf %263 : vector<8x128xf32> to vector<8x128xbf16>
      %c0_58 = arith.constant 0 : index
      %c0_59 = arith.constant 0 : index
      %269 = vector.load %arg5[%c0_58, %c0_59] : memref<128x128xbf16, #tpu.memory_space<vmem>>, vector<128x128xbf16>
      %cst_60 = arith.constant dense<0.000000e+00> : vector<8x128xf32>
      %270 = tpu.matmul %268, %269, %cst_60 {dimension_numbers = #tpu.dot_dimension_numbers<[1], [0], [0], [1], [0, 0, 1, 1], [], []>} : vector<8x128xbf16>, vector<128x128xbf16>, vector<8x128xf32> -> vector<8x128xf32>
      %c0_61 = arith.constant 0 : index
      %c0_62 = arith.constant 0 : index
      %271 = vector.load %arg6[%c0_61, %c0_62] : memref<1x128xf32, #tpu.memory_space<vmem>>, vector<1x128xf32>
      %272 = vector.broadcast %271 : vector<1x128xf32> to vector<8x128xf32>
      %273 = arith.addf %270, %272 : vector<8x128xf32>
      %c0_63 = arith.constant 0 : index
      %c0_64 = arith.constant 0 : index
      %274 = vector.load %arg7[%c0_63, %c0_64] : memref<8x128xf32, #tpu.memory_space<vmem>>, vector<8x128xf32>
      tpu.vector_store %arg7[%c0_63, %c0_64], %273 {strides = array<i32>} : memref<8x128xf32, #tpu.memory_space<vmem>>, vector<8x128xf32>,
    } else {
    }
    return
  }
  func.func @transform_0(%arg0: i32, %arg1: i32) -> (i32, i32, i32) {
    %c0_i32 = arith.constant 0 : i32
    %c0_i32_0 = arith.constant 0 : i32
    return %arg1, %arg0, %c0_i32 : i32, i32, i32
  }
  func.func @transform_1(%arg0: i32, %arg1: i32) -> (i32, i32) {
    %c0_i32 = arith.constant 0 : i32
    %c0_i32_0 = arith.constant 0 : i32
    %c0_i32_1 = arith.constant 0 : i32
    return %c0_i32, %c0_i32_0 : i32, i32
  }
  func.func @transform_2(%arg0: i32, %arg1: i32) -> (i32, i32) {
    %c0_i32 = arith.constant 0 : i32
    %c0_i32_0 = arith.constant 0 : i32
    %c0_i32_1 = arith.constant 0 : i32
    return %c0_i32, %c0_i32_0 : i32, i32
  }
  func.func @transform_3(%arg0: i32, %arg1: i32) -> (i32, i32) {
    %c0_i32 = arith.constant 0 : i32
    %c0_i32_0 = arith.constant 0 : i32
    %c0_i32_1 = arith.constant 0 : i32
    return %c0_i32, %c0_i32_0 : i32, i32
  }
  func.func @transform_4(%arg0: i32, %arg1: i32) -> (i32, i32) {
    %c0_i32 = arith.constant 0 : i32
    %c0_i32_0 = arith.constant 0 : i32
    %c0_i32_1 = arith.constant 0 : i32
    return %c0_i32, %c0_i32_0 : i32, i32
  }
  func.func @transform_5(%arg0: i32, %arg1: i32) -> (i32, i32) {
    %c0_i32 = arith.constant 0 : i32
    %c0_i32_0 = arith.constant 0 : i32
    return %arg0, %c0_i32 : i32, i32
  }
}

</mosaic_0001>

<bundles_post_ra>
// kernel: tpu_custom_call.1
= control target key start
LH: loop header
LB: loop body
LE: loop exit
PB: predicated region body
PF: predicated region fallthrough
CT: control target
= control target key end

     0   :  { %6 = vsyncpa [#allocation3], 0  ;;  %s448_s0 = inlined_call_operand.hbm [shape: f32[8,128], index: 0, kind: input, shape index: {}]   ;;  %s449_s1 = inlined_call_operand.hbm [shape: f32[16,128], index: 1, kind: output, shape index: {}]  }
   0x1   :  { %7 = vsyncpa [#allocation4], 0 }
   0x2   :  { %9 = vsyncpa [#allocation4 + $0x1], 0  ;;  %s348_s6 = smov 0   ;;  %s350_s7 = smov 0  }
   0x3   :  { %s352_s8 = smov 0   ;;  %s354_s9 = smov 0  }
   0x4 LB: > { %s369_s10 = sadd.s32 4294967295, %s334_s9   ;;  %s184_s11 = sadd.s32 4294967294, %s334_s9   ;;  %s334_s9 = sphi %s354_s9, %s457_s9   ;;  %s330_s8 = sphi %s352_s8, %s456_s8   ;;  %s326_s7 = sphi %s350_s7, %s455_s7   ;;  %s322_s6 = sphi %s348_s6, %s454_s6  }
   0x5   : > { %s373_s12 = sadd.s32 1, %s334_s9   ;;  %s43_s13 = sadd.s32 1, %s330_s8 }
   0x6   : > { %s40_s14 = ssub.s32 %s334_s9, %s373_s12  ;;  %p53_p0 = scmp.ne.s32.totalorder %s330_s8, %s326_s7 }
   0x7   : > { %p41_p1 = scmp.eq.s32.totalorder %s40_s14, 0  ;;  %p54_p2 = scmp.eq.s32.totalorder %s369_s10, 1 }
   0x8   : > { %p59_p3 = scmp.ne.s32.totalorder %s326_s7, %s322_s6  ;;  %p60_p4 = scmp.eq.s32.totalorder %s184_s11, 1 }
   0x9   : > { %s384_s15 = scalar_select %p41_p1, %s330_s8, %s43_s13  }
   0xa   : > { %p386_p5 = por %p54_p2, %p53_p0  ;;  %p390_p6 = por %p60_p4, %p59_p3 }
   0xb   : > { %p185_p7 = scmp.ge.s32.totalorder %s334_s9, 1  ;;  %p67_p8 = scmp.lt.s32.totalorder %s334_s9, 3 }
   0xc   : > { %s451_s17 = scalar_select %p390_p6, 1, 0 }
   0xd   : > { %p208_p9 = scmp.eq.s32.totalorder %s369_s10, 0  ;;  %p397_p10 = pnand %p185_p7, %p67_p8 }
   0xe   : > { %s336_s19 = smov [#allocation2]  }
   0xf   : > { %s80_s20 = sshll.u32 %s336_s19, 4  ;;  %p200_p11 = pneg %p397_p10  ;;  %s81_s20 = int_to_ptr.vmem [resolvable:$true] %s80_s20 }
  0x10   : > { %s255_s21 = scalar_lea.vmem %s81_s20, 128  ;;  %p263_p3 = scmp.lt.s32.totalorder %s81_s20, %s81_s20 }
  0x11   : > { %p201_p12 = pnand %p208_p9, %p200_p11  ;;  %p256_p0 = scmp.ne.s32.totalorder %s81_s20, %s255_s21 }
  0x12   : > { %p264_p4 = scmp.lt.s32.totalorder %s255_s21, %s255_s21 }
  0x13   : > { %p246_p13 = pneg %p201_p12 }
  0x14   : > { %p265_p6 = por %p264_p4, %p263_p3 }
  0x15   : > { %p258_p1 = pnand %p256_p0, %p246_p13 }
  0x17   : > { %p259_p2 = pneg %p258_p1 }
  0x19   : > { %p266_p7 = pnand %p265_p6, %p259_p2 }
  0x1b   : > { %269 = shalt.err (!%p266_p7)
}
  0x1c   : > { %203 = dma.hbm_to_vmem [thread:$0]  (!%p201_p12), %s448_s0, 128, %s81_s20, [#allocation3]  }
  0x1d   : > { %93 = sbr.rel (%p397_p10) target bundleno = 60 (0x3c), region = 24 }
  0x22   : > { %313 = dma.done.wait (%p208_p9), [#allocation3], 128  }
  0x23   : > { %315 = vsyncadd (%p208_p9), [#allocation3], 4294967168  ;;  %s105_s24 = sand.u32 1, %s326_s7   ;;  %s191_s28 = sshll.u32 %s369_s10, 7  ;;  %v108_v0 = vld [vmem:[#allocation2] sm:$0xff] }
  0x24   : > { %s189_s25 = sshll.u32 %s105_s24, 3  ;;  %v109_v1 = vadd.f32 1.0, %v108_v0  ;;  %s123_s2 = scalar_lea.hbm %s449_s1, %s191_s28 }
  0x25   : > { %s107_s26 = scalar_lea.vmem [#allocation5], %s189_s25  ;;  %s112_s3 = scalar_lea.sflag [#allocation4], %s105_s24 }
  0x26   : > { %s125_s27 = sshll.u32 %s107_s26, 4  ;;  %110 = vst [vmem:[%s107_s26] sm:$0xff] %v109_v1  ;;  %s337_s5 = smov [#allocation5]   ;;  %s126_s27 = int_to_ptr.vmem [resolvable:$true] %s125_s27 }
  0x27   : > { %s270_s4 = scalar_lea.vmem %s126_s27, 128  ;;  %s274_s11 = sshll.u32 %s337_s5, 4  ;;  %s275_s11 = int_to_ptr.vmem [resolvable:$false] %s274_s11 }
  0x28   : > { %p271_p6 = scmp.ne.s32.totalorder %s126_s27, %s270_s4  ;;  %s276_s13 = scalar_lea.vmem %s275_s11, 256 }
  0x29   : > { %p277_p10 = scmp.lt.s32.totalorder %s126_s27, %s275_s11  ;;  %p278_p11 = scmp.lt.s32.totalorder %s276_s13, %s270_s4 }
  0x2a   : > { %p272_p8 = pnand %p271_p6, %p386_p5 }
  0x2b   : > { %p279_p12 = por %p278_p11, %p277_p10 }
  0x2c   : > { %p273_p9 = pneg %p272_p8 }
  0x2e   : > { %p280_p13 = pnand %p279_p12, %p273_p9 }
  0x30   : > { %283 = shalt.err (!%p280_p13)
}
  0x31   : > { %s284_s10 = scalar_lea.hbm %s123_s2, 128  ;;  %s288_s19 = scalar_lea.hbm %s449_s1, 256 }
  0x32   : > { %p285_p0 = scmp.ne.s32.totalorder %s123_s2, %s284_s10  ;;  %p289_p3 = scmp.lt.s32.totalorder %s123_s2, %s449_s1 }
  0x33   : > { %p290_p4 = scmp.lt.s32.totalorder %s288_s19, %s284_s10 }
  0x34   : > { %p286_p1 = pnand %p285_p0, %p386_p5 }
  0x35   : > { %p291_p7 = por %p290_p4, %p289_p3 }
  0x36   : > { %p287_p2 = pneg %p286_p1 }
  0x38   : > { %p292_p6 = pnand %p291_p7, %p287_p2 }
  0x3a   : > { %295 = shalt.err (!%p292_p6)
}
  0x3b   : > { %198 = dma.vmem_to_hbm [thread:$0]  (%p386_p5), %s126_s27, 128, %s123_s2, %s112_s3  }
  0x3c PF: > { %p210_p8 = scmp.ge.s32.totalorder %s334_s9, 2  ;;  %s137_s22 = sand.u32 1, %s322_s6  }
  0x3d   : > { %p453_p9 = scmp.ne.s32.totalorder %s451_s17, 0  ;;  %s138_s23 = scalar_lea.sflag [#allocation4], %s137_s22 }
  0x3f   : > { %p205_p10 = pnand %p210_p8, %p453_p9 }
  0x41   : > { %p206_p11 = pneg %p205_p10 }
  0x43   : > { %317 = dma.done.wait (%p206_p11), %s138_s23, 128  }
  0x44   : > { %319 = vsyncadd (%p206_p11), %s138_s23, 4294967168  ;;  %p12_p12 = scmp.ge.s32.totalorder %s373_s12, 4   ;;  %s454_s6 = smov %s326_s7 }
  0x45   : > { %s455_s7 = smov %s330_s8  ;;  %s456_s8 = smov %s384_s15 }
  0x46   : > { %s457_s9 = smov %s373_s12  ;;  %14 = sbr.rel (!%p12_p12) target bundleno = 4 (0x4), region = 61 }
  0x4b   :  { %143 = vsyncpa [#allocation3], 1 }
  0x4c   :  { %145 = vsyncpa [#allocation3 + $0x1], 1 }
  0x4d   :  { %146 = vsyncpa [#allocation4], 1 }
  0x4e   :  { %148 = vsyncpa [#allocation4 + $0x1], 1 }

// kernel: gru_forward.2
= control target key start
LH: loop header
LB: loop body
LE: loop exit
PB: predicated region body
PF: predicated region fallthrough
CT: control target
= control target key end

     0   :  { %8 = vsyncpa [#allocation3], 0  ;;  %s445_s12 = smov [#allocation2]   ;;  %s564_s0 = inlined_call_operand.vmem [shape: bf16[64,4], index: 0, kind: input, shape index: {}]   ;;  %s565_s1 = inlined_call_operand.vmem [shape: bf16[4,384], index: 1, kind: input, shape index: {}]   ;;  %s566_s2 = inlined_call_operand.hbm [shape: f32[1,384], index: 2, kind: input, shape index: {}]   ;;  %s567_s3 = inlined_call_operand.vmem [shape: bf16[64,384], index: 3, kind: output, shape index: {}]  }
   0x1   :  { %s19_s13 = sshll.u32 %s445_s12, 4  ;;  %s20_s13 = int_to_ptr.vmem [resolvable:$true] %s19_s13 }
   0x2   :  { %s431_s14 = scalar_lea.vmem %s20_s13, 48  ;;  %s435_s15 = scalar_lea.vmem %s20_s13, 64 }
   0x3   :  { %p432_p0 = scmp.ne.s32.totalorder %s20_s13, %s431_s14  ;;  %p436_p1 = scmp.lt.s32.totalorder %s20_s13, %s20_s13 }
   0x4   :  { %p437_p2 = scmp.lt.s32.totalorder %s435_s15, %s431_s14 }
   0x6   :  { %p438_p3 = por %p437_p2, %p436_p1 }
   0x8   :  { %p439_p4 = pnand %p438_p3, %p432_p0 }
   0xa   :  { %442 = shalt.err (!%p439_p4)
}
   0xb   :  { %22 = dma.hbm_to_vmem [thread:$0]  %s566_s2, 48, %s20_s13, [#allocation3]  }
   0xc   :  { %443 = dma.done.wait [#allocation3], 48  }
   0xd   :  { %444 = vsyncadd [#allocation3], 4294967248  ;;  %v38_v0 = vlaneseq  ;;  %v446_v1 = vmov 1983009808   ;;  %v447_v3 = vmov 0   ;;  %vm103_vm0 = vcmask 1041408  }
   0xe   :  { %v76_v2 = vunpack.c.l.s4 %v446_v1  ;;  %145 = vmatprep.mubr.bf16.mxu0 %v447_v3  ;;  %175 = vmatprep.mubr.bf16.mxu1 %v447_v3  ;;  %v35_v7 = vld [vmem:[%s565_s1] sm:$0x3f]  ;;  %v420_v14 = vld [vmem:[%s564_s0 + $0x18] sm:$0xff]   ;;  %vm90_vm1 = vcmask 31744   ;;  %v421_v16 = vld [vmem:[%s564_s0 + $0x8] sm:$0xff]  }
   0xf   :  { %v39_v4 = vshrl.u32 %v38_v0, 7  ;;  %v74_v8 = vcombine.high %v35_v7, %v35_v7  ;;  %v419_v13 = vld [vmem:[%s564_s0] sm:$0xff]   ;;  %v422_v17 = vld [vmem:[%s564_s0 + $0x10] sm:$0xff]  }
  0x10   :  { %v77_v5 = vunpack.c.0.s8 %v76_v2  ;;  %v36_v20 = vld [vmem:[#allocation2] sm:$0x7] }
  0x11   :  { %v40_v18 = vsub.s32 0, %v39_v4  ;;  %v44_v19 = vsub.s32 1, %v39_v4  ;;  %v48_v25 = vsub.s32 2, %v39_v4 }
  0x12   :  { %v80_v6 = vsub.s32 %v77_v5, %v39_v4 }
  0x13   :  { %v486_v21 = vrot.slane %v36_v20, %v40_v18  ;;  %v488_v22 = vrot.slane %v36_v20, %v44_v19  ;;  %v494_v34 = vrot.slane %v36_v20, %v48_v25 }
  0x14   :  { %v81_v9 = vrot.slane %v35_v7, %v80_v6  ;;  %v88_v12 = vrot.slane %v74_v8, %v80_v6 }
  0x16   :  { %v89_v10 = vcombine.high %v81_v9, %v81_v9  ;;  %v105_v11 = vsel %vm103_vm0, %v81_v9, 0  ;;  %v111_v15 = vsel %vm103_vm0, %v88_v12, 0 }
  0x18   :  { %356 = vmatprep.subr.msk.bf16.mxu0 %vm103_vm0, %v89_v10  ;;  %412 = vmatprep.subr.msk.bf16.mxu1 %vm103_vm0, %v89_v10 }
  0x19   :  { %128 = vmatpush1.bf16.msra.mxu0 %v105_v11  ;;  %413 = vmatpush1.bf16.msra.mxu1 %v105_v11 }
  0x1a   :  { %414 = vmatprep.subr.msk.bf16.mxu1 %vm103_vm0, %v88_v12 }
  0x1c   :  { %357 = vmatmul.mubr.msk.bf16.vlgmr.msra.gmra.mxu0 %vm90_vm1, %v419_v13  ;;  %360 = vmatmul.mubr.msk.bf16.vlgmr.msra.gmra.mxu1 %vm90_vm1, %v420_v14 }
  0x1d   :  { %403 = vmatpush3.bf16.msra.mxu1 %v111_v15  ;;  %155 = vmatprep.mubr.bf16.mxu0 %v447_v3 }
  0x1e   :  { %404 = vmatprep.mubr.msk.bf16.mxu1 %vm90_vm1, %v419_v13 }
  0x24   :  { %358 = vmatmul.mubr.msk.bf16.gmra.mxu0 %vm90_vm1, %v421_v16  ;;  %405 = vmatmul.mubr.msk.bf16.vlgmr.msra.gmra.mxu1 %vm90_vm1, %v421_v16 }
  0x25   :  { %165 = vmatprep.mubr.bf16.mxu0 %v447_v3  ;;  %408 = vmatprep.mubr.msk.bf16.mxu1 %vm90_vm1, %v422_v17 }
  0x2c   :  { %359 = vmatmul.mubr.msk.bf16.gmra.mxu0 %vm90_vm1, %v422_v17  ;;  %409 = vmatmul.mubr.msk.bf16.gmra.mxu1 %vm90_vm1, %v420_v14 }
  0xdc   :  { %v147_v23 = vpop.f32.mrf.mxu0  ;;  %v177_v24 = vpop.f32.mrf.mxu1 }
  0xdd   :  { %v148_v28 = vadd.f32 %v147_v23, %v486_v21  ;;  %v178_v29 = vadd.f32 %v177_v24, %v486_v21 }
  0xde   :  { %v149_v26 = vpop.f32.mrf.mxu0  ;;  %v179_v27 = vpop.f32.mrf.mxu1 }
  0xdf   :  { %v150_v30 = vadd.f32 %v149_v26, %v488_v22  ;;  %v180_v31 = vadd.f32 %v179_v27, %v488_v22 }
  0xe0   :  { %v151_v32 = vpop.f32.mrf.mxu0  ;;  %v181_v33 = vpop.f32.mrf.mxu1 }
  0xe1   :  { %v381_v35 = vpack.c.bf16 %v150_v30, %v148_v28  ;;  %v393_v36 = vpack.c.bf16 %v180_v31, %v178_v29  ;;  %v152_v39 = vadd.f32 %v151_v32, %v486_v21  ;;  %v182_v40 = vadd.f32 %v181_v33, %v486_v21 }
  0xe2   :  { %v153_v37 = vpop.f32.mrf.mxu0  ;;  %v183_v38 = vpop.f32.mrf.mxu1 }
  0xe3   :  { %331 = vst [vmem:[%s567_s3] sm:$0xff] %v381_v35  ;;  %343 = vst [vmem:[%s567_s3 + $0x48] sm:$0xff] %v393_v36  ;;  %v154_v41 = vadd.f32 %v153_v37, %v488_v22  ;;  %v184_v42 = vadd.f32 %v183_v38, %v488_v22 }
  0xe4   :  { %v157_v43 = vpop.f32.mrf.mxu0  ;;  %v406_v44 = vpop.f32.mrf.mxu1 }
  0xe5   :  { %v383_v45 = vpack.c.bf16 %v154_v41, %v152_v39  ;;  %v395_v46 = vpack.c.bf16 %v184_v42, %v182_v40  ;;  %v229_v47 = vadd.f32 %v406_v44, %v494_v34  ;;  %v158_v50 = vadd.f32 %v157_v43, %v486_v21 }
  0xe6   :  { %v159_v48 = vpop.f32.mrf.mxu0  ;;  %v220_v49 = vpop.f32.mrf.mxu1 }
  0xe7   :  { %333 = vst [vmem:[%s567_s3 + $0xc] sm:$0xff] %v383_v45  ;;  %345 = vst [vmem:[%s567_s3 + $0x54] sm:$0xff] %v395_v46  ;;  %v386_v51 = vpack.c.bf16 %v229_v47, %v229_v47  ;;  %v160_v52 = vadd.f32 %v159_v48, %v488_v22  ;;  %v221_v53 = vadd.f32 %v220_v49, %v494_v34 }
  0xe8   :  { %v161_v54 = vpop.f32.mrf.mxu0  ;;  %v407_v55 = vpop.f32.mrf.mxu1 }
  0xe9   :  { %336 = vst [vmem:[%s567_s3 + $0x20] sm:$0xf] %v386_v51  ;;  %v385_v56 = vpack.c.bf16 %v160_v52, %v158_v50  ;;  %v382_v57 = vpack.c.bf16 %v221_v53, %v221_v53  ;;  %v232_v58 = vadd.f32 %v407_v55, %v494_v34  ;;  %v162_v61 = vadd.f32 %v161_v54, %v486_v21 }
  0xea   :  { %v163_v59 = vpop.f32.mrf.mxu0  ;;  %v223_v60 = vpop.f32.mrf.mxu1 }
  0xeb   :  { %335 = vst [vmem:[%s567_s3 + $0x18] sm:$0xff] %v385_v56  ;;  %332 = vst [vmem:[%s567_s3 + $0x8] sm:$0xf] %v382_v57  ;;  %v388_v62 = vpack.c.bf16 %v232_v58, %v232_v58  ;;  %v164_v63 = vadd.f32 %v163_v59, %v488_v22  ;;  %v224_v0 = vadd.f32 %v223_v60, %v494_v34 }
  0xec   :  { %v167_v1 = vpop.f32.mrf.mxu0  ;;  %v410_v2 = vpop.f32.mrf.mxu1 }
  0xed   :  { %338 = vst [vmem:[%s567_s3 + $0x2c] sm:$0xf] %v388_v62  ;;  %v387_v3 = vpack.c.bf16 %v164_v63, %v162_v61  ;;  %v384_v4 = vpack.c.bf16 %v224_v0, %v224_v0  ;;  %v245_v5 = vadd.f32 %v410_v2, %v494_v34  ;;  %v168_v8 = vadd.f32 %v167_v1, %v486_v21 }
  0xee   :  { %v169_v6 = vpop.f32.mrf.mxu0  ;;  %v236_v7 = vpop.f32.mrf.mxu1 }
  0xef   :  { %337 = vst [vmem:[%s567_s3 + $0x24] sm:$0xff] %v387_v3  ;;  %334 = vst [vmem:[%s567_s3 + $0x14] sm:$0xf] %v384_v4  ;;  %v394_v9 = vpack.c.bf16 %v245_v5, %v245_v5  ;;  %v170_v10 = vadd.f32 %v169_v6, %v488_v22  ;;  %v237_v11 = vadd.f32 %v236_v7, %v494_v34 }
  0xf0   :  { %v171_v12 = vpop.f32.mrf.mxu0  ;;  %v411_v13 = vpop.f32.mrf.mxu1 }
  0xf1   :  { %344 = vst [vmem:[%s567_s3 + $0x50] sm:$0xf] %v394_v9  ;;  %v389_v14 = vpack.c.bf16 %v170_v10, %v168_v8  ;;  %v390_v15 = vpack.c.bf16 %v237_v11, %v237_v11  ;;  %v248_v16 = vadd.f32 %v411_v13, %v494_v34  ;;  %v172_v19 = vadd.f32 %v171_v12, %v486_v21 }
  0xf2   :  { %v173_v17 = vpop.f32.mrf.mxu0  ;;  %v239_v18 = vpop.f32.mrf.mxu1 }
  0xf3   :  { %339 = vst [vmem:[%s567_s3 + $0x30] sm:$0xff] %v389_v14  ;;  %340 = vst [vmem:[%s567_s3 + $0x38] sm:$0xf] %v390_v15  ;;  %v396_v20 = vpack.c.bf16 %v248_v16, %v248_v16  ;;  %v174_v23 = vadd.f32 %v173_v17, %v488_v22  ;;  %v240_v24 = vadd.f32 %v239_v18, %v494_v34 }
  0xf5   :  { %346 = vst [vmem:[%s567_s3 + $0x5c] sm:$0xf] %v396_v20  ;;  %v391_v25 = vpack.c.bf16 %v174_v23, %v172_v19  ;;  %v392_v26 = vpack.c.bf16 %v240_v24, %v240_v24 }
  0xf7   :  { %341 = vst [vmem:[%s567_s3 + $0x3c] sm:$0xff] %v391_v25  ;;  %342 = vst [vmem:[%s567_s3 + $0x44] sm:$0xf] %v392_v26 }
  0xf8   :  { %351 = vsyncpa [#allocation3], 1 }

// kernel: gru_forward.3
= control target key start
LH: loop header
LB: loop body
LE: loop exit
PB: predicated region body
PF: predicated region fallthrough
CT: control target
= control target key end

     0   :  { %10 = vsyncpa [#allocation4], 0  ;;  %s1695_s18 = smov [#allocation3]   ;;  %s2270_s0 = inlined_call_operand.vmem [shape: bf16[8,8,384], index: 0, kind: input, shape index: {}]   ;;  %s2271_s1 = inlined_call_operand.vmem [shape: bf16[128,384], index: 1, kind: input, shape index: {}]   ;;  %s2272_s2 = inlined_call_operand.vmem [shape: f32[1,128], index: 2, kind: input, shape index: {}]   ;;  %s2273_s3 = inlined_call_operand.hbm [shape: bf16[128,128], index: 3, kind: input, shape index: {}]   ;;  %s2274_s4 = inlined_call_operand.vmem [shape: f32[1,128], index: 4, kind: input, shape index: {}]   ;;  %s2275_s5 = inlined_call_operand.vmem [shape: f32[8,128], index: 5, kind: output, shape index: {}]  }
   0x1   :  { %s22_s19 = sshll.u32 %s1695_s18, 4  ;;  %s23_s19 = int_to_ptr.vmem [resolvable:$true] %s22_s19 }
   0x2   :  { %s1681_s20 = scalar_lea.vmem %s23_s19, 1024  ;;  %p1686_p1 = scmp.lt.s32.totalorder %s23_s19, %s23_s19 }
   0x3   :  { %p1682_p0 = scmp.ne.s32.totalorder %s23_s19, %s1681_s20  ;;  %p1687_p2 = scmp.lt.s32.totalorder %s1681_s20, %s1681_s20 }
   0x5   :  { %p1688_p3 = por %p1687_p2, %p1686_p1 }
   0x7   :  { %p1689_p4 = pnand %p1688_p3, %p1682_p0 }
   0x9   :  { %1692 = shalt.err (!%p1689_p4)
}
   0xa   :  { %s1696_s21 = smov 64   ;;  %s1697_s22 = smov 4  }
   0xb   :  { %28 = dma.hbm_to_vmem [thread:$0]  %s2273_s3, 1024, %s23_s19, [#allocation4], %s1696_s21, %s1696_s21, %s1697_s22  }
   0xc   :  { %1693 = dma.done.wait [#allocation4], 1024  }
   0xd   :  { %1694 = vsyncadd [#allocation4], 4294966272  ;;  %v1698_v0 = vmov 0.0   ;;  %v1699_v1 = vmov 0   ;;  %vm1700_vm0 = vmmov 0   ;;  %v1701_v25 = vmov 0.0|0.0  }
   0xe   :  { %1354 = vmatprep.subr.bf16.mxu1 %v1698_v0  ;;  %241 = vmatprep.mubr.bf16.mxu0 %v1699_v1  ;;  %v1742_v2 = vld [vmem:[%s2271_s1 + $0xac] ss:$12 sps:$4 sm:$0xff]   ;;  %v1747_v3 = vld [vmem:[%s2271_s1 + $0xa8] ss:$12 sps:$4 sm:$0xff]   ;;  %v1759_v5 = vld [vmem:[%s2271_s1 + $0x90] ss:$12 sps:$4 sm:$0xff]  }
   0xf   :  { %1370 = vmatprep.mubr.msk.bf16.mxu1 %vm1700_vm0, %v1698_v0  ;;  %209 = vmatprep.subr.bf16.mxu0 %v1742_v2  ;;  %v1753_v4 = vld [vmem:[%s2271_s1 + $0x94] ss:$12 sps:$4 sm:$0xff]   ;;  %v1765_v6 = vld [vmem:[%s2271_s1 + $0x7c] ss:$12 sps:$4 sm:$0xff]   ;;  %v1771_v7 = vld [vmem:[%s2271_s1 + $0x78] ss:$12 sps:$4 sm:$0xff]  }
  0x10   :  { %210 = vmatpush1.bf16.msra.mxu0 %v1747_v3  ;;  %v1777_v8 = vld [vmem:[%s2271_s1 + $0x64] ss:$12 sps:$4 sm:$0xff]   ;;  %v1788_v10 = vld [vmem:[%s2271_s1 + $0x60] ss:$12 sps:$4 sm:$0xff]   ;;  %v1806_v13 = vld [vmem:[%s2271_s1 + $0x48] ss:$12 sps:$4 sm:$0xff]  }
  0x11   :  { %211 = vmatprep.subr.bf16.mxu0 %v1753_v4  ;;  %v1782_v9 = vld [vmem:[%s2271_s1 + $0xb0] ss:$12 sps:$4 sm:$0xff]   ;;  %v1793_v11 = vld [vmem:[%s2271_s1 + $0x4c] ss:$12 sps:$4 sm:$0xff]   ;;  %v1812_v14 = vld [vmem:[%s2271_s1 + $0x34] ss:$12 sps:$4 sm:$0xff]  }
  0x12   :  { %1355 = vmatpush3.bf16.msra.mxu1 %v1782_v9  ;;  %v1800_v12 = vld [vmem:[%s2271_s1 + $0x98] ss:$12 sps:$4 sm:$0xff]   ;;  %v1819_v15 = vld [vmem:[%s2271_s1 + $0x80] ss:$12 sps:$4 sm:$0xff]   ;;  %v1824_v16 = vld [vmem:[%s2271_s1 + $0x30] ss:$12 sps:$4 sm:$0xff]  }
  0x13   :  { %1356 = vmatprep.subr.bf16.mxu1 %v1698_v0  ;;  %v1830_v17 = vld [vmem:[%s2271_s1 + $0x1c] ss:$12 sps:$4 sm:$0xff]   ;;  %v1843_v19 = vld [vmem:[%s2271_s1 + $0x18] ss:$12 sps:$4 sm:$0xff]   ;;  %v1864_v22 = vld [vmem:[%s2271_s1] ss:$12 sps:$4 sm:$0xff]  }
  0x14   :  { %212 = vmatpush1.bf16.msra.mxu0 %v1759_v5  ;;  %v1835_v18 = vld [vmem:[%s2271_s1 + $0x68] ss:$12 sps:$4 sm:$0xff]   ;;  %v1851_v20 = vld [vmem:[%s2271_s1 + $0x4] ss:$12 sps:$4 sm:$0xff]   ;;  %v1879_v24 = vld [vmem:[%s2271_s1 + $0x20] ss:$12 sps:$4 sm:$0xff]  }
  0x15   :  { %213 = vmatprep.subr.bf16.mxu0 %v1765_v6  ;;  %v1857_v21 = vld [vmem:[%s2271_s1 + $0x50] ss:$12 sps:$4 sm:$0xff]   ;;  %v1871_v23 = vld [vmem:[%s2271_s1 + $0x38] ss:$12 sps:$4 sm:$0xff]   ;;  %v1889_v26 = vld [vmem:[%s2271_s1 + $0x8] ss:$12 sps:$4 sm:$0xff]  }
  0x16   :  { %1357 = vmatpush3.bf16.msra.mxu1 %v1800_v12  ;;  %v290_v27 = vld [vmem:[%s2270_s0] sm:$0xff]  ;;  %v1938_v46 = vld [vmem:[%s2270_s0 + $0x8] ss:$12 sps:$4 sm:$0xff]   ;;  %v1236_v60 = vld [vmem:[%s2270_s0 + $0xc] sm:$0xff] }
  0x17   :  { %1358 = vmatprep.subr.bf16.mxu1 %v1698_v0  ;;  %v292_v28 = vunpack.c.l.bf16 %v290_v27  ;;  %v293_v33 = vunpack.c.h.bf16 %v290_v27  ;;  %v1933_v45 = vld [vmem:[%s2272_s2] ss:$0 sm:$0xff]  ;;  %v294_v49 = vunpack.c.l.bf16 %v1938_v46  ;;  %v402_v61 = vunpack.c.l.bf16 %v1236_v60 }
  0x18   :  { %214 = vmatpush1.bf16.msra.mxu0 %v1771_v7 }
  0x19   :  { %215 = vmatprep.subr.bf16.mxu0 %v1777_v8 }
  0x1a   :  { %1359 = vmatpush3.bf16.msra.mxu1 %v1819_v15 }
  0x1b   :  { %1360 = vmatprep.subr.bf16.mxu1 %v1698_v0 }
  0x1c   :  { %216 = vmatpush1.bf16.msra.mxu0 %v1788_v10 }
  0x1d   :  { %217 = vmatprep.subr.bf16.mxu0 %v1793_v11 }
  0x1e   :  { %1361 = vmatpush3.bf16.msra.mxu1 %v1835_v18 }
  0x1f   :  { %1362 = vmatprep.subr.bf16.mxu1 %v1698_v0 }
  0x20   :  { %218 = vmatpush1.bf16.msra.mxu0 %v1806_v13 }
  0x21   :  { %219 = vmatprep.subr.bf16.mxu0 %v1812_v14 }
  0x22   :  { %1363 = vmatpush3.bf16.msra.mxu1 %v1857_v21 }
  0x23   :  { %1364 = vmatprep.subr.bf16.mxu1 %v1698_v0 }
  0x24   :  { %220 = vmatpush1.bf16.msra.mxu0 %v1824_v16 }
  0x25   :  { %221 = vmatprep.subr.bf16.mxu0 %v1830_v17 }
  0x26   :  { %1365 = vmatpush3.bf16.msra.mxu1 %v1871_v23 }
  0x27   :  { %1366 = vmatprep.subr.bf16.mxu1 %v1698_v0 }
  0x28   :  { %222 = vmatpush1.bf16.msra.mxu0 %v1843_v19 }
  0x29   :  { %223 = vmatprep.subr.bf16.mxu0 %v1851_v20 }
  0x2a   :  { %1367 = vmatpush3.bf16.msra.mxu1 %v1879_v24 }
  0x2b   :  { %1368 = vmatprep.subr.bf16.mxu1 %v1698_v0 }
  0x2c   :  { %224 = vmatpush1.bf16.msra.mxu0 %v1864_v22 }
  0x2d   :  { %318 = vmatprep.subr.bf16.mxu0 %v1742_v2 }
  0x2e   :  { %1369 = vmatpush3.bf16.msra.mxu1 %v1889_v26 }
  0x2f   :  { %242 = vmatmul.mubr.bf16.vlgmr.msra.gmra.mxu0 %v1701_v25  ;;  %1374 = vmatprep.subr.bf16.mxu1 %v1698_v0 }
  0x30   :  { %319 = vmatpush1.bf16.msra.mxu0 %v1747_v3  ;;  %350 = vmatprep.mubr.bf16.mxu0 %v1699_v1 }
  0x31   :  { %320 = vmatprep.subr.bf16.mxu0 %v1753_v4  ;;  %1371 = vmatmul.mubr.bf16.vlgmr.msra.gmra.mxu1 %v1701_v25 }
  0x32   :  { %1375 = vmatpush3.bf16.msra.mxu1 %v1782_v9  ;;  %1390 = vmatprep.mubr.msk.bf16.mxu1 %vm1700_vm0, %v1698_v0 }
  0x33   :  { %1376 = vmatprep.subr.bf16.mxu1 %v1698_v0 }
  0x34   :  { %321 = vmatpush1.bf16.msra.mxu0 %v1759_v5 }
  0x35   :  { %322 = vmatprep.subr.bf16.mxu0 %v1765_v6 }
  0x36   :  { %1377 = vmatpush3.bf16.msra.mxu1 %v1800_v12 }
  0x37   :  { %1378 = vmatprep.subr.bf16.mxu1 %v1698_v0 }
  0x38   :  { %323 = vmatpush1.bf16.msra.mxu0 %v1771_v7 }
  0x39   :  { %324 = vmatprep.subr.bf16.mxu0 %v1777_v8 }
  0x3a   :  { %1379 = vmatpush3.bf16.msra.mxu1 %v1819_v15 }
  0x3b   :  { %1380 = vmatprep.subr.bf16.mxu1 %v1698_v0 }
  0x3c   :  { %325 = vmatpush1.bf16.msra.mxu0 %v1788_v10 }
  0x3d   :  { %326 = vmatprep.subr.bf16.mxu0 %v1793_v11 }
  0x3e   :  { %1381 = vmatpush3.bf16.msra.mxu1 %v1835_v18 }
  0x3f   :  { %1382 = vmatprep.subr.bf16.mxu1 %v1698_v0 }
  0x40   :  { %327 = vmatpush1.bf16.msra.mxu0 %v1806_v13 }
  0x41   :  { %328 = vmatprep.subr.bf16.mxu0 %v1812_v14 }
  0x42   :  { %1383 = vmatpush3.bf16.msra.mxu1 %v1857_v21 }
  0x43   :  { %1384 = vmatprep.subr.bf16.mxu1 %v1698_v0 }
  0x44   :  { %329 = vmatpush1.bf16.msra.mxu0 %v1824_v16 }
  0x45   :  { %330 = vmatprep.subr.bf16.mxu0 %v1830_v17 }
  0x46   :  { %1385 = vmatpush3.bf16.msra.mxu1 %v1871_v23 }
  0x47   :  { %1386 = vmatprep.subr.bf16.mxu1 %v1698_v0 }
  0x48   :  { %331 = vmatpush1.bf16.msra.mxu0 %v1843_v19 }
  0x49   :  { %332 = vmatprep.subr.bf16.mxu0 %v1851_v20 }
  0x4a   :  { %1387 = vmatpush3.bf16.msra.mxu1 %v1879_v24 }
  0x4b   :  { %1388 = vmatprep.subr.bf16.mxu1 %v1698_v0 }
  0x4c   :  { %333 = vmatpush1.bf16.msra.mxu0 %v1864_v22 }
  0x4d   :  { %428 = vmatprep.subr.bf16.mxu0 %v1742_v2 }
  0x4e   :  { %1389 = vmatpush3.bf16.msra.mxu1 %v1889_v26 }
  0x4f   :  { %1394 = vmatprep.subr.bf16.mxu1 %v1698_v0 }
  0xef   :  { %v243_v29 = vpop.f32.mrf.mxu0 }
  0xf0   :  { %v295_v30 = vadd.f32 %v292_v28, %v243_v29 }
  0xf1   :  { %v245_v31 = vpop.f32.mrf.mxu0  ;;  %v284_v37 = vpop.f32.mrf.mxu1 }
  0xf2   :  { %v1234_v32 = vmul.f32 -1.442695, %v295_v30  ;;  %v302_v36 = vadd.f32 %v293_v33, %v245_v31  ;;  %v309_v48 = vadd.f32 %v1933_v45, %v284_v37  ;;  %v403_v30 = vunpack.c.h.bf16 %v1236_v60 }
  0xf3   :  { %v247_v34 = vpop.f32.mrf.mxu0  ;;  %v1372_v39 = vpop.f32.mrf.mxu1 }
  0xf4   :  { %1581 = vpow2.f32 %v1234_v32  ;;  %v1235_v38 = vmul.f32 -1.442695, %v302_v36 }
  0xf5   :  { %v248_v35 = vpop.f32.mrf.mxu0  ;;  %v287_v40 = vpop.f32.mrf.mxu1 }
  0xf6   :  { %1583 = vpow2.f32 %v1235_v38 }
  0xf7   :  { %v1373_v41 = vpop.f32.mrf.mxu1 }
  0xf8   :  { %v404_v41 = vunpack.c.h.bf16 %v1938_v46  ;;  %v1240_v46 = vld [vmem:[%s2270_s0 + $0x18] sm:$0xff] }
 0x101   :  { %v1582_v42 = vpop.eup %1581 }
 0x102   :  { %v299_v43 = vadd.f32 1.0, %v1582_v42 }
 0x103   :  { %v1584_v44 = vpop.eup %1583 }
 0x104   :  { %1585 = vrcp.f32 %v299_v43  ;;  %v306_v47 = vadd.f32 1.0, %v1584_v44 }
 0x106   :  { %1587 = vrcp.f32 %v306_v47 }
 0x111   :  { %v1586_v50 = vpop.eup %1585 }
 0x112   :  { %v310_v51 = vmul.f32 %v1586_v50, %v309_v48 }
 0x113   :  { %v1588_v53 = vpop.eup %1587 }
 0x114   :  { %v311_v52 = vadd.f32 %v310_v51, %v294_v49  ;;  %v313_v54 = vsub.f32 1.0, %v1588_v53  ;;  %v315_v57 = vmul.f32 0.0, %v1588_v53 }
 0x116   :  { %1589 = vtanh.f32 %v311_v52 }
 0x123   :  { %v1590_v55 = vpop.eup %1589 }
 0x124   :  { %v314_v56 = vmul.f32 %v1590_v55, %v313_v54  ;;  %v512_v55 = vunpack.c.l.bf16 %v1240_v46 }
 0x126   :  { %v1942_v58 = vadd.f32 %v315_v57, %v314_v56 }
 0x128   :  { %v317_v59 = vpack.c.bf16 %v1942_v58, %v1942_v58 }
 0x12a   :  { %351 = vmatmul.mubr.bf16.vlgmr.msra.gmra.mxu0 %v317_v59  ;;  %1391 = vmatmul.mubr.bf16.vlgmr.msra.gmra.mxu1 %v317_v59 }
 0x12b   :  { %429 = vmatpush1.bf16.msra.mxu0 %v1747_v3  ;;  %1395 = vmatpush3.bf16.msra.mxu1 %v1782_v9 }
 0x12c   :  { %430 = vmatprep.subr.bf16.mxu0 %v1753_v4  ;;  %1396 = vmatprep.subr.bf16.mxu1 %v1698_v0 }
 0x12d   :  { %460 = vmatprep.mubr.bf16.mxu0 %v1699_v1  ;;  %1410 = vmatprep.mubr.msk.bf16.mxu1 %vm1700_vm0, %v1698_v0 }
 0x12f   :  { %431 = vmatpush1.bf16.msra.mxu0 %v1759_v5  ;;  %1397 = vmatpush3.bf16.msra.mxu1 %v1800_v12 }
 0x130   :  { %432 = vmatprep.subr.bf16.mxu0 %v1765_v6  ;;  %1398 = vmatprep.subr.bf16.mxu1 %v1698_v0 }
 0x133   :  { %433 = vmatpush1.bf16.msra.mxu0 %v1771_v7  ;;  %1399 = vmatpush3.bf16.msra.mxu1 %v1819_v15 }
 0x134   :  { %434 = vmatprep.subr.bf16.mxu0 %v1777_v8  ;;  %1400 = vmatprep.subr.bf16.mxu1 %v1698_v0 }
 0x137   :  { %435 = vmatpush1.bf16.msra.mxu0 %v1788_v10  ;;  %1401 = vmatpush3.bf16.msra.mxu1 %v1835_v18 }
 0x138   :  { %436 = vmatprep.subr.bf16.mxu0 %v1793_v11  ;;  %1402 = vmatprep.subr.bf16.mxu1 %v1698_v0 }
 0x13b   :  { %437 = vmatpush1.bf16.msra.mxu0 %v1806_v13  ;;  %1403 = vmatpush3.bf16.msra.mxu1 %v1857_v21 }
 0x13c   :  { %438 = vmatprep.subr.bf16.mxu0 %v1812_v14  ;;  %1404 = vmatprep.subr.bf16.mxu1 %v1698_v0 }
 0x13f   :  { %439 = vmatpush1.bf16.msra.mxu0 %v1824_v16  ;;  %1405 = vmatpush3.bf16.msra.mxu1 %v1871_v23 }
 0x140   :  { %440 = vmatprep.subr.bf16.mxu0 %v1830_v17  ;;  %1406 = vmatprep.subr.bf16.mxu1 %v1698_v0 }
 0x143   :  { %441 = vmatpush1.bf16.msra.mxu0 %v1843_v19  ;;  %1407 = vmatpush3.bf16.msra.mxu1 %v1879_v24 }
 0x144   :  { %442 = vmatprep.subr.bf16.mxu0 %v1851_v20  ;;  %1408 = vmatprep.subr.bf16.mxu1 %v1698_v0 }
 0x147   :  { %443 = vmatpush1.bf16.msra.mxu0 %v1864_v22  ;;  %1409 = vmatpush3.bf16.msra.mxu1 %v1889_v26 }
 0x148   :  { %538 = vmatprep.subr.bf16.mxu0 %v1742_v2  ;;  %1414 = vmatprep.subr.bf16.mxu1 %v1698_v0 }
 0x1ea   :  { %v352_v62 = vpop.f32.mrf.mxu0  ;;  %v393_v63 = vpop.f32.mrf.mxu1 }
 0x1eb   :  { %v405_v25 = vadd.f32 %v402_v61, %v352_v62  ;;  %v419_v42 = vadd.f32 %v1933_v45, %v393_v63  ;;  %v513_v62 = vunpack.c.h.bf16 %v1240_v46 }
 0x1ec   :  { %v354_v27 = vpop.f32.mrf.mxu0  ;;  %v1392_v28 = vpop.f32.mrf.mxu1 }
 0x1ed   :  { %v1238_v29 = vmul.f32 -1.442695, %v405_v25  ;;  %v412_v35 = vadd.f32 %v403_v30, %v354_v27 }
 0x1ee   :  { %v356_v31 = vpop.f32.mrf.mxu0  ;;  %v396_v32 = vpop.f32.mrf.mxu1 }
 0x1ef   :  { %1591 = vpow2.f32 %v1238_v29  ;;  %v1239_v36 = vmul.f32 -1.442695, %v412_v35 }
 0x1f0   :  { %v357_v33 = vpop.f32.mrf.mxu0  ;;  %v1393_v34 = vpop.f32.mrf.mxu1 }
 0x1f1   :  { %1593 = vpow2.f32 %v1239_v36  ;;  %v2032_v34 = vld [vmem:[%s2270_s0 + $0x20] ss:$12 sps:$4 sm:$0xff]  }
 0x1f2   :  { %v514_v36 = vunpack.c.l.bf16 %v2032_v34 }
 0x1fc   :  { %v1592_v37 = vpop.eup %1591 }
 0x1fd   :  { %v409_v38 = vadd.f32 1.0, %v1592_v37 }
 0x1fe   :  { %v1594_v39 = vpop.eup %1593 }
 0x1ff   :  { %1595 = vrcp.f32 %v409_v38  ;;  %v416_v40 = vadd.f32 1.0, %v1594_v39 }
 0x201   :  { %1597 = vrcp.f32 %v416_v40 }
 0x20c   :  { %v1596_v43 = vpop.eup %1595 }
 0x20d   :  { %v420_v44 = vmul.f32 %v1596_v43, %v419_v42 }
 0x20e   :  { %v1598_v48 = vpop.eup %1597 }
 0x20f   :  { %v421_v47 = vadd.f32 %v420_v44, %v404_v41  ;;  %v423_v49 = vsub.f32 1.0, %v1598_v48  ;;  %v425_v52 = vmul.f32 %v1598_v48, %v1942_v58 }
 0x211   :  { %1599 = vtanh.f32 %v421_v47 }
 0x21e   :  { %v1600_v50 = vpop.eup %1599 }
 0x21f   :  { %v424_v51 = vmul.f32 %v1600_v50, %v423_v49  ;;  %v1244_v50 = vld [vmem:[%s2270_s0 + $0x24] sm:$0xff] }
 0x221   :  { %v1987_v53 = vadd.f32 %v425_v52, %v424_v51  ;;  %v622_v51 = vunpack.c.l.bf16 %v1244_v50 }
 0x223   :  { %v427_v54 = vpack.c.bf16 %v1987_v53, %v1987_v53 }
 0x225   :  { %461 = vmatmul.mubr.bf16.vlgmr.msra.gmra.mxu0 %v427_v54  ;;  %1411 = vmatmul.mubr.bf16.vlgmr.msra.gmra.mxu1 %v427_v54 }
 0x226   :  { %539 = vmatpush1.bf16.msra.mxu0 %v1747_v3  ;;  %1415 = vmatpush3.bf16.msra.mxu1 %v1782_v9 }
 0x227   :  { %540 = vmatprep.subr.bf16.mxu0 %v1753_v4  ;;  %1416 = vmatprep.subr.bf16.mxu1 %v1698_v0 }
 0x228   :  { %570 = vmatprep.mubr.bf16.mxu0 %v1699_v1  ;;  %1430 = vmatprep.mubr.msk.bf16.mxu1 %vm1700_vm0, %v1698_v0 }
 0x22a   :  { %541 = vmatpush1.bf16.msra.mxu0 %v1759_v5  ;;  %1417 = vmatpush3.bf16.msra.mxu1 %v1800_v12 }
 0x22b   :  { %542 = vmatprep.subr.bf16.mxu0 %v1765_v6  ;;  %1418 = vmatprep.subr.bf16.mxu1 %v1698_v0 }
 0x22e   :  { %543 = vmatpush1.bf16.msra.mxu0 %v1771_v7  ;;  %1419 = vmatpush3.bf16.msra.mxu1 %v1819_v15 }
 0x22f   :  { %544 = vmatprep.subr.bf16.mxu0 %v1777_v8  ;;  %1420 = vmatprep.subr.bf16.mxu1 %v1698_v0 }
 0x232   :  { %545 = vmatpush1.bf16.msra.mxu0 %v1788_v10  ;;  %1421 = vmatpush3.bf16.msra.mxu1 %v1835_v18 }
 0x233   :  { %546 = vmatprep.subr.bf16.mxu0 %v1793_v11  ;;  %1422 = vmatprep.subr.bf16.mxu1 %v1698_v0 }
 0x236   :  { %547 = vmatpush1.bf16.msra.mxu0 %v1806_v13  ;;  %1423 = vmatpush3.bf16.msra.mxu1 %v1857_v21 }
 0x237   :  { %548 = vmatprep.subr.bf16.mxu0 %v1812_v14  ;;  %1424 = vmatprep.subr.bf16.mxu1 %v1698_v0 }
 0x23a   :  { %549 = vmatpush1.bf16.msra.mxu0 %v1824_v16  ;;  %1425 = vmatpush3.bf16.msra.mxu1 %v1871_v23 }
 0x23b   :  { %550 = vmatprep.subr.bf16.mxu0 %v1830_v17  ;;  %1426 = vmatprep.subr.bf16.mxu1 %v1698_v0 }
 0x23e   :  { %551 = vmatpush1.bf16.msra.mxu0 %v1843_v19  ;;  %1427 = vmatpush3.bf16.msra.mxu1 %v1879_v24 }
 0x23f   :  { %552 = vmatprep.subr.bf16.mxu0 %v1851_v20  ;;  %1428 = vmatprep.subr.bf16.mxu1 %v1698_v0 }
 0x242   :  { %553 = vmatpush1.bf16.msra.mxu0 %v1864_v22  ;;  %1429 = vmatpush3.bf16.msra.mxu1 %v1889_v26 }
 0x243   :  { %648 = vmatprep.subr.bf16.mxu0 %v1742_v2  ;;  %1434 = vmatprep.subr.bf16.mxu1 %v1698_v0 }
 0x2e5   :  { %v462_v56 = vpop.f32.mrf.mxu0  ;;  %v503_v57 = vpop.f32.mrf.mxu1 }
 0x2e6   :  { %v515_v58 = vadd.f32 %v512_v55, %v462_v56  ;;  %v529_v37 = vadd.f32 %v1933_v45, %v503_v57  ;;  %v623_v57 = vunpack.c.h.bf16 %v1244_v50 }
 0x2e7   :  { %v464_v59 = vpop.f32.mrf.mxu0  ;;  %v1412_v60 = vpop.f32.mrf.mxu1 }
 0x2e8   :  { %v1242_v61 = vmul.f32 -1.442695, %v515_v58  ;;  %v522_v29 = vadd.f32 %v513_v62, %v464_v59 }
 0x2e9   :  { %v466_v63 = vpop.f32.mrf.mxu0  ;;  %v506_v25 = vpop.f32.mrf.mxu1 }
 0x2ea   :  { %1601 = vpow2.f32 %v1242_v61  ;;  %v1243_v30 = vmul.f32 -1.442695, %v522_v29 }
 0x2eb   :  { %v467_v27 = vpop.f32.mrf.mxu0  ;;  %v1413_v28 = vpop.f32.mrf.mxu1 }
 0x2ec   :  { %1603 = vpow2.f32 %v1243_v30  ;;  %v624_v30 = vunpack.c.h.bf16 %v2032_v34  ;;  %v1248_v34 = vld [vmem:[%s2270_s0 + $0x30] sm:$0xff] }
 0x2f7   :  { %v1602_v31 = vpop.eup %1601 }
 0x2f8   :  { %v519_v32 = vadd.f32 1.0, %v1602_v31 }
 0x2f9   :  { %v1604_v33 = vpop.eup %1603 }
 0x2fa   :  { %1605 = vrcp.f32 %v519_v32  ;;  %v526_v35 = vadd.f32 1.0, %v1604_v33 }
 0x2fc   :  { %1607 = vrcp.f32 %v526_v35 }
 0x307   :  { %v1606_v38 = vpop.eup %1605 }
 0x308   :  { %v530_v39 = vmul.f32 %v1606_v38, %v529_v37 }
 0x309   :  { %v1608_v41 = vpop.eup %1607 }
 0x30a   :  { %v531_v40 = vadd.f32 %v530_v39, %v514_v36  ;;  %v533_v42 = vsub.f32 1.0, %v1608_v41  ;;  %v535_v47 = vmul.f32 %v1608_v41, %v1987_v53 }
 0x30c   :  { %1609 = vtanh.f32 %v531_v40 }
 0x319   :  { %v1610_v43 = vpop.eup %1609 }
 0x31a   :  { %v534_v44 = vmul.f32 %v1610_v43, %v533_v42  ;;  %v732_v43 = vunpack.c.l.bf16 %v1248_v34 }
 0x31c   :  { %v2037_v48 = vadd.f32 %v535_v47, %v534_v44 }
 0x31e   :  { %v537_v49 = vpack.c.bf16 %v2037_v48, %v2037_v48 }
 0x320   :  { %571 = vmatmul.mubr.bf16.vlgmr.msra.gmra.mxu0 %v537_v49  ;;  %1431 = vmatmul.mubr.bf16.vlgmr.msra.gmra.mxu1 %v537_v49 }
 0x321   :  { %649 = vmatpush1.bf16.msra.mxu0 %v1747_v3  ;;  %1435 = vmatpush3.bf16.msra.mxu1 %v1782_v9 }
 0x322   :  { %650 = vmatprep.subr.bf16.mxu0 %v1753_v4  ;;  %1436 = vmatprep.subr.bf16.mxu1 %v1698_v0 }
 0x323   :  { %680 = vmatprep.mubr.bf16.mxu0 %v1699_v1  ;;  %1450 = vmatprep.mubr.msk.bf16.mxu1 %vm1700_vm0, %v1698_v0 }
 0x325   :  { %651 = vmatpush1.bf16.msra.mxu0 %v1759_v5  ;;  %1437 = vmatpush3.bf16.msra.mxu1 %v1800_v12 }
 0x326   :  { %652 = vmatprep.subr.bf16.mxu0 %v1765_v6  ;;  %1438 = vmatprep.subr.bf16.mxu1 %v1698_v0 }
 0x329   :  { %653 = vmatpush1.bf16.msra.mxu0 %v1771_v7  ;;  %1439 = vmatpush3.bf16.msra.mxu1 %v1819_v15 }
 0x32a   :  { %654 = vmatprep.subr.bf16.mxu0 %v1777_v8  ;;  %1440 = vmatprep.subr.bf16.mxu1 %v1698_v0 }
 0x32d   :  { %655 = vmatpush1.bf16.msra.mxu0 %v1788_v10  ;;  %1441 = vmatpush3.bf16.msra.mxu1 %v1835_v18 }
 0x32e   :  { %656 = vmatprep.subr.bf16.mxu0 %v1793_v11  ;;  %1442 = vmatprep.subr.bf16.mxu1 %v1698_v0 }
 0x331   :  { %657 = vmatpush1.bf16.msra.mxu0 %v1806_v13  ;;  %1443 = vmatpush3.bf16.msra.mxu1 %v1857_v21 }
 0x332   :  { %658 = vmatprep.subr.bf16.mxu0 %v1812_v14  ;;  %1444 = vmatprep.subr.bf16.mxu1 %v1698_v0 }
 0x335   :  { %659 = vmatpush1.bf16.msra.mxu0 %v1824_v16  ;;  %1445 = vmatpush3.bf16.msra.mxu1 %v1871_v23 }
 0x336   :  { %660 = vmatprep.subr.bf16.mxu0 %v1830_v17  ;;  %1446 = vmatprep.subr.bf16.mxu1 %v1698_v0 }
 0x339   :  { %661 = vmatpush1.bf16.msra.mxu0 %v1843_v19  ;;  %1447 = vmatpush3.bf16.msra.mxu1 %v1879_v24 }
 0x33a   :  { %662 = vmatprep.subr.bf16.mxu0 %v1851_v20  ;;  %1448 = vmatprep.subr.bf16.mxu1 %v1698_v0 }
 0x33d   :  { %663 = vmatpush1.bf16.msra.mxu0 %v1864_v22  ;;  %1449 = vmatpush3.bf16.msra.mxu1 %v1889_v26 }
 0x33e   :  { %758 = vmatprep.subr.bf16.mxu0 %v1742_v2  ;;  %1454 = vmatprep.subr.bf16.mxu1 %v1698_v0 }
 0x3e0   :  { %v572_v52 = vpop.f32.mrf.mxu0  ;;  %v613_v53 = vpop.f32.mrf.mxu1 }
 0x3e1   :  { %v625_v54 = vadd.f32 %v622_v51, %v572_v52  ;;  %v639_v31 = vadd.f32 %v1933_v45, %v613_v53  ;;  %v733_v52 = vunpack.c.h.bf16 %v1248_v34 }
 0x3e2   :  { %v574_v46 = vpop.f32.mrf.mxu0  ;;  %v1432_v55 = vpop.f32.mrf.mxu1 }
 0x3e3   :  { %v1246_v56 = vmul.f32 -1.442695, %v625_v54  ;;  %v632_v62 = vadd.f32 %v623_v57, %v574_v46 }
 0x3e4   :  { %v576_v58 = vpop.f32.mrf.mxu0  ;;  %v616_v59 = vpop.f32.mrf.mxu1 }
 0x3e5   :  { %1611 = vpow2.f32 %v1246_v56  ;;  %v1247_v63 = vmul.f32 -1.442695, %v632_v62 }
 0x3e6   :  { %v577_v60 = vpop.f32.mrf.mxu0  ;;  %v1433_v61 = vpop.f32.mrf.mxu1 }
 0x3e7   :  { %1613 = vpow2.f32 %v1247_v63  ;;  %v2127_v61 = vld [vmem:[%s2270_s0 + $0x38] ss:$12 sps:$4 sm:$0xff]  }
 0x3e8   :  { %v734_v63 = vunpack.c.l.bf16 %v2127_v61 }
 0x3f2   :  { %v1612_v25 = vpop.eup %1611 }
 0x3f3   :  { %v629_v27 = vadd.f32 1.0, %v1612_v25 }
 0x3f4   :  { %v1614_v28 = vpop.eup %1613 }
 0x3f5   :  { %1615 = vrcp.f32 %v629_v27  ;;  %v636_v29 = vadd.f32 1.0, %v1614_v28 }
 0x3f7   :  { %1617 = vrcp.f32 %v636_v29 }
 0x402   :  { %v1616_v32 = vpop.eup %1615 }
 0x403   :  { %v640_v33 = vmul.f32 %v1616_v32, %v639_v31 }
 0x404   :  { %v1618_v36 = vpop.eup %1617 }
 0x405   :  { %v641_v35 = vadd.f32 %v640_v33, %v624_v30  ;;  %v643_v37 = vsub.f32 1.0, %v1618_v36  ;;  %v645_v40 = vmul.f32 %v1618_v36, %v2037_v48 }
 0x407   :  { %1619 = vtanh.f32 %v641_v35 }
 0x414   :  { %v1620_v38 = vpop.eup %1619 }
 0x415   :  { %v644_v39 = vmul.f32 %v1620_v38, %v643_v37 }
 0x417   :  { %v2082_v41 = vadd.f32 %v645_v40, %v644_v39 }
 0x419   :  { %v647_v42 = vpack.c.bf16 %v2082_v41, %v2082_v41 }
 0x41b   :  { %681 = vmatmul.mubr.bf16.vlgmr.msra.gmra.mxu0 %v647_v42  ;;  %1451 = vmatmul.mubr.bf16.vlgmr.msra.gmra.mxu1 %v647_v42 }
 0x41c   :  { %759 = vmatpush1.bf16.msra.mxu0 %v1747_v3  ;;  %1455 = vmatpush3.bf16.msra.mxu1 %v1782_v9 }
 0x41d   :  { %760 = vmatprep.subr.bf16.mxu0 %v1753_v4  ;;  %1456 = vmatprep.subr.bf16.mxu1 %v1698_v0 }
 0x41e   :  { %790 = vmatprep.mubr.bf16.mxu0 %v1699_v1  ;;  %1470 = vmatprep.mubr.msk.bf16.mxu1 %vm1700_vm0, %v1698_v0 }
 0x420   :  { %761 = vmatpush1.bf16.msra.mxu0 %v1759_v5  ;;  %1457 = vmatpush3.bf16.msra.mxu1 %v1800_v12 }
 0x421   :  { %762 = vmatprep.subr.bf16.mxu0 %v1765_v6  ;;  %1458 = vmatprep.subr.bf16.mxu1 %v1698_v0 }
 0x424   :  { %763 = vmatpush1.bf16.msra.mxu0 %v1771_v7  ;;  %1459 = vmatpush3.bf16.msra.mxu1 %v1819_v15 }
 0x425   :  { %764 = vmatprep.subr.bf16.mxu0 %v1777_v8  ;;  %1460 = vmatprep.subr.bf16.mxu1 %v1698_v0 }
 0x428   :  { %765 = vmatpush1.bf16.msra.mxu0 %v1788_v10  ;;  %1461 = vmatpush3.bf16.msra.mxu1 %v1835_v18 }
 0x429   :  { %766 = vmatprep.subr.bf16.mxu0 %v1793_v11  ;;  %1462 = vmatprep.subr.bf16.mxu1 %v1698_v0 }
 0x42c   :  { %767 = vmatpush1.bf16.msra.mxu0 %v1806_v13  ;;  %1463 = vmatpush3.bf16.msra.mxu1 %v1857_v21 }
 0x42d   :  { %768 = vmatprep.subr.bf16.mxu0 %v1812_v14  ;;  %1464 = vmatprep.subr.bf16.mxu1 %v1698_v0 }
 0x430   :  { %769 = vmatpush1.bf16.msra.mxu0 %v1824_v16  ;;  %1465 = vmatpush3.bf16.msra.mxu1 %v1871_v23 }
 0x431   :  { %770 = vmatprep.subr.bf16.mxu0 %v1830_v17  ;;  %1466 = vmatprep.subr.bf16.mxu1 %v1698_v0 }
 0x434   :  { %771 = vmatpush1.bf16.msra.mxu0 %v1843_v19  ;;  %1467 = vmatpush3.bf16.msra.mxu1 %v1879_v24 }
 0x435   :  { %772 = vmatprep.subr.bf16.mxu0 %v1851_v20  ;;  %1468 = vmatprep.subr.bf16.mxu1 %v1698_v0 }
 0x438   :  { %773 = vmatpush1.bf16.msra.mxu0 %v1864_v22  ;;  %1469 = vmatpush3.bf16.msra.mxu1 %v1889_v26 }
 0x439   :  { %868 = vmatprep.subr.bf16.mxu0 %v1742_v2  ;;  %1474 = vmatprep.subr.bf16.mxu1 %v1698_v0 }
 0x4db   :  { %v682_v44 = vpop.f32.mrf.mxu0  ;;  %v723_v47 = vpop.f32.mrf.mxu1 }
 0x4dc   :  { %v735_v48 = vadd.f32 %v732_v43, %v682_v44  ;;  %v749_v25 = vadd.f32 %v1933_v45, %v723_v47  ;;  %v844_v43 = vunpack.c.h.bf16 %v2127_v61  ;;  %v1666_v61 = vld [vmem:[%s2271_s1 + $0x7c] ss:$12 sps:$4 sm:$0xff]  }
 0x4dd   :  { %v684_v49 = vpop.f32.mrf.mxu0  ;;  %v1452_v50 = vpop.f32.mrf.mxu1 }
 0x4de   :  { %v1250_v51 = vmul.f32 -1.442695, %v735_v48  ;;  %v742_v56 = vadd.f32 %v733_v52, %v684_v49 }
 0x4df   :  { %v686_v53 = vpop.f32.mrf.mxu0  ;;  %v726_v54 = vpop.f32.mrf.mxu1 }
 0x4e0   :  { %1621 = vpow2.f32 %v1250_v51  ;;  %v1251_v57 = vmul.f32 -1.442695, %v742_v56  ;;  %v1661_v56 = vld [vmem:[%s2271_s1 + $0xa8] ss:$12 sps:$4 sm:$0xff]  }
 0x4e1   :  { %v687_v46 = vpop.f32.mrf.mxu0  ;;  %v1453_v55 = vpop.f32.mrf.mxu1 }
 0x4e2   :  { %1623 = vpow2.f32 %v1251_v57  ;;  %v1662_v57 = vld [vmem:[%s2271_s1 + $0xb0] ss:$12 sps:$4 sm:$0xff]  }
 0x4ed   :  { %v1622_v58 = vpop.eup %1621 }
 0x4ee   :  { %v739_v59 = vadd.f32 1.0, %v1622_v58  ;;  %v1663_v58 = vld [vmem:[%s2271_s1 + $0x94] ss:$12 sps:$4 sm:$0xff]  }
 0x4ef   :  { %v1624_v60 = vpop.eup %1623 }
 0x4f0   :  { %1625 = vrcp.f32 %v739_v59  ;;  %v746_v62 = vadd.f32 1.0, %v1624_v60  ;;  %v1664_v59 = vld [vmem:[%s2271_s1 + $0x90] ss:$12 sps:$4 sm:$0xff]   ;;  %v1665_v60 = vld [vmem:[%s2271_s1 + $0x98] ss:$12 sps:$4 sm:$0xff]  }
 0x4f2   :  { %1627 = vrcp.f32 %v746_v62  ;;  %v1668_v62 = vld [vmem:[%s2271_s1 + $0x64] ss:$12 sps:$4 sm:$0xff]  }
 0x4fd   :  { %v1626_v27 = vpop.eup %1625 }
 0x4fe   :  { %v750_v28 = vmul.f32 %v1626_v27, %v749_v25  ;;  %v1670_v25 = vld [vmem:[%s2271_s1 + $0x4c] ss:$12 sps:$4 sm:$0xff]   ;;  %v1672_v27 = vld [vmem:[%s2271_s1 + $0x34] ss:$12 sps:$4 sm:$0xff]  }
 0x4ff   :  { %v1628_v30 = vpop.eup %1627 }
 0x500   :  { %v751_v29 = vadd.f32 %v750_v28, %v734_v63  ;;  %v753_v31 = vsub.f32 1.0, %v1628_v30  ;;  %v755_v35 = vmul.f32 %v1628_v30, %v2082_v41  ;;  %v1669_v63 = vld [vmem:[%s2271_s1 + $0x60] ss:$12 sps:$4 sm:$0xff]  }
 0x502   :  { %1629 = vtanh.f32 %v751_v29 }
 0x50f   :  { %v1630_v32 = vpop.eup %1629 }
 0x510   :  { %v754_v33 = vmul.f32 %v1630_v32, %v753_v31 }
 0x512   :  { %v2132_v36 = vadd.f32 %v755_v35, %v754_v33 }
 0x514   :  { %v757_v37 = vpack.c.bf16 %v2132_v36, %v2132_v36 }
 0x516   :  { %791 = vmatmul.mubr.bf16.vlgmr.msra.gmra.mxu0 %v757_v37  ;;  %1471 = vmatmul.mubr.bf16.vlgmr.msra.gmra.mxu1 %v757_v37  ;;  %v2245_v37 = vld [vmem:[%s2270_s0 + $0x50] ss:$12 sps:$4 sm:$0xff]  }
 0x517   :  { %869 = vmatpush1.bf16.msra.mxu0 %v1747_v3  ;;  %1475 = vmatpush3.bf16.msra.mxu1 %v1782_v9  ;;  %v1252_v3 = vld [vmem:[%s2270_s0 + $0x3c] sm:$0xff] }
 0x518   :  { %870 = vmatprep.subr.bf16.mxu0 %v1753_v4  ;;  %1476 = vmatprep.subr.bf16.mxu1 %v1698_v0  ;;  %v842_v4 = vunpack.c.l.bf16 %v1252_v3 }
 0x519   :  { %900 = vmatprep.mubr.bf16.mxu0 %v1699_v1  ;;  %1490 = vmatprep.mubr.msk.bf16.mxu1 %vm1700_vm0, %v1698_v0 }
 0x51b   :  { %871 = vmatpush1.bf16.msra.mxu0 %v1759_v5  ;;  %1477 = vmatpush3.bf16.msra.mxu1 %v1800_v12 }
 0x51c   :  { %872 = vmatprep.subr.bf16.mxu0 %v1765_v6  ;;  %1478 = vmatprep.subr.bf16.mxu1 %v1698_v0 }
 0x51f   :  { %873 = vmatpush1.bf16.msra.mxu0 %v1771_v7  ;;  %1479 = vmatpush3.bf16.msra.mxu1 %v1819_v15 }
 0x520   :  { %874 = vmatprep.subr.bf16.mxu0 %v1777_v8  ;;  %1480 = vmatprep.subr.bf16.mxu1 %v1698_v0 }
 0x523   :  { %875 = vmatpush1.bf16.msra.mxu0 %v1788_v10  ;;  %1481 = vmatpush3.bf16.msra.mxu1 %v1835_v18 }
 0x524   :  { %876 = vmatprep.subr.bf16.mxu0 %v1793_v11  ;;  %1482 = vmatprep.subr.bf16.mxu1 %v1698_v0  ;;  %v843_v11 = vunpack.c.h.bf16 %v1252_v3 }
 0x527   :  { %877 = vmatpush1.bf16.msra.mxu0 %v1806_v13  ;;  %1483 = vmatpush3.bf16.msra.mxu1 %v1857_v21 }
 0x528   :  { %878 = vmatprep.subr.bf16.mxu0 %v1812_v14  ;;  %1484 = vmatprep.subr.bf16.mxu1 %v1698_v0 }
 0x52b   :  { %879 = vmatpush1.bf16.msra.mxu0 %v1824_v16  ;;  %1485 = vmatpush3.bf16.msra.mxu1 %v1871_v23 }
 0x52c   :  { %880 = vmatprep.subr.bf16.mxu0 %v1830_v17  ;;  %1486 = vmatprep.subr.bf16.mxu1 %v1698_v0 }
 0x52f   :  { %881 = vmatpush1.bf16.msra.mxu0 %v1843_v19  ;;  %1487 = vmatpush3.bf16.msra.mxu1 %v1879_v24 }
 0x530   :  { %882 = vmatprep.subr.bf16.mxu0 %v1851_v20  ;;  %1488 = vmatprep.subr.bf16.mxu1 %v1698_v0 }
 0x533   :  { %883 = vmatpush1.bf16.msra.mxu0 %v1864_v22  ;;  %1489 = vmatpush3.bf16.msra.mxu1 %v1889_v26 }
 0x534   :  { %978 = vmatprep.subr.bf16.mxu0 %v1742_v2  ;;  %1494 = vmatprep.subr.bf16.mxu1 %v1698_v0 }
 0x5d6   :  { %v792_v5 = vpop.f32.mrf.mxu0  ;;  %v833_v6 = vpop.f32.mrf.mxu1 }
 0x5d7   :  { %v845_v7 = vadd.f32 %v842_v4, %v792_v5  ;;  %v859_v44 = vadd.f32 %v1933_v45, %v833_v6  ;;  %v954_v4 = vunpack.c.l.bf16 %v2245_v37 }
 0x5d8   :  { %v794_v8 = vpop.f32.mrf.mxu0  ;;  %v1472_v9 = vpop.f32.mrf.mxu1 }
 0x5d9   :  { %v1254_v10 = vmul.f32 -1.442695, %v845_v7  ;;  %v852_v2 = vadd.f32 %v843_v11, %v794_v8 }
 0x5da   :  { %v796_v12 = vpop.f32.mrf.mxu0  ;;  %v836_v13 = vpop.f32.mrf.mxu1 }
 0x5db   :  { %1631 = vpow2.f32 %v1254_v10  ;;  %v1255_v39 = vmul.f32 -1.442695, %v852_v2  ;;  %v1573_v2 = vld [vmem:[#allocation3 + $0x38] sm:$0xff]  }
 0x5dc   :  { %v797_v14 = vpop.f32.mrf.mxu0  ;;  %v1473_v38 = vpop.f32.mrf.mxu1 }
 0x5dd   :  { %1633 = vpow2.f32 %v1255_v39  ;;  %v1574_v39 = vld [vmem:[#allocation3 + $0x30] sm:$0xff]  }
 0x5e8   :  { %v1632_v40 = vpop.eup %1631 }
 0x5e9   :  { %v849_v41 = vadd.f32 1.0, %v1632_v40  ;;  %v1575_v40 = vld [vmem:[#allocation3 + $0x28] sm:$0xff]  }
 0x5ea   :  { %v1634_v42 = vpop.eup %1633 }
 0x5eb   :  { %1635 = vrcp.f32 %v849_v41  ;;  %v856_v34 = vadd.f32 1.0, %v1634_v42  ;;  %v1576_v41 = vld [vmem:[#allocation3 + $0x20] sm:$0xff]   ;;  %v1577_v42 = vld [vmem:[#allocation3 + $0x18] sm:$0xff]  }
 0x5ed   :  { %1637 = vrcp.f32 %v856_v34  ;;  %v1578_v34 = vld [vmem:[#allocation3 + $0x10] sm:$0xff]  }
 0x5f8   :  { %v1636_v47 = vpop.eup %1635 }
 0x5f9   :  { %v860_v48 = vmul.f32 %v1636_v47, %v859_v44  ;;  %v1580_v44 = vld [vmem:[#allocation3] sm:$0xff]   ;;  %v1260_v47 = vld [vmem:[%s2270_s0 + $0x54] sm:$0xff] }
 0x5fa   :  { %v1638_v50 = vpop.eup %1637 }
 0x5fb   :  { %v861_v49 = vadd.f32 %v860_v48, %v844_v43  ;;  %v863_v51 = vsub.f32 1.0, %v1638_v50  ;;  %v865_v54 = vmul.f32 %v1638_v50, %v2132_v36  ;;  %v1579_v43 = vld [vmem:[#allocation3 + $0x8] sm:$0xff]   ;;  %v1062_v48 = vunpack.c.l.bf16 %v1260_v47 }
 0x5fd   :  { %1639 = vtanh.f32 %v861_v49 }
 0x60a   :  { %v1640_v52 = vpop.eup %1639 }
 0x60b   :  { %v864_v53 = vmul.f32 %v1640_v52, %v863_v51 }
 0x60d   :  { %v2177_v46 = vadd.f32 %v865_v54, %v864_v53 }
 0x60f   :  { %v867_v55 = vpack.c.bf16 %v2177_v46, %v2177_v46 }
 0x611   :  { %901 = vmatmul.mubr.bf16.vlgmr.msra.gmra.mxu0 %v867_v55  ;;  %1491 = vmatmul.mubr.bf16.vlgmr.msra.gmra.mxu1 %v867_v55 }
 0x612   :  { %979 = vmatpush1.bf16.msra.mxu0 %v1661_v56  ;;  %1495 = vmatpush3.bf16.msra.mxu1 %v1662_v57 }
 0x613   :  { %980 = vmatprep.subr.bf16.mxu0 %v1663_v58  ;;  %1496 = vmatprep.subr.bf16.mxu1 %v1698_v0 }
 0x614   :  { %1010 = vmatprep.mubr.bf16.mxu0 %v1699_v1  ;;  %1510 = vmatprep.mubr.msk.bf16.mxu1 %vm1700_vm0, %v1698_v0  ;;  %v1667_v1 = vld [vmem:[%s2271_s1 + $0x78] ss:$12 sps:$4 sm:$0xff]  }
 0x616   :  { %981 = vmatpush1.bf16.msra.mxu0 %v1664_v59  ;;  %1497 = vmatpush3.bf16.msra.mxu1 %v1665_v60 }
 0x617   :  { %982 = vmatprep.subr.bf16.mxu0 %v1666_v61  ;;  %1498 = vmatprep.subr.bf16.mxu1 %v1698_v0 }
 0x61a   :  { %983 = vmatpush1.bf16.msra.mxu0 %v1667_v1  ;;  %1499 = vmatpush3.bf16.msra.mxu1 %v1819_v15  ;;  %v1671_v15 = vld [vmem:[%s2271_s1 + $0x48] ss:$12 sps:$4 sm:$0xff]  }
 0x61b   :  { %984 = vmatprep.subr.bf16.mxu0 %v1668_v62  ;;  %1500 = vmatprep.subr.bf16.mxu1 %v1698_v0 }
 0x61e   :  { %985 = vmatpush1.bf16.msra.mxu0 %v1669_v63  ;;  %1501 = vmatpush3.bf16.msra.mxu1 %v1835_v18  ;;  %v1064_v63 = vunpack.c.h.bf16 %v2245_v37 }
 0x61f   :  { %986 = vmatprep.subr.bf16.mxu0 %v1670_v25  ;;  %1502 = vmatprep.subr.bf16.mxu1 %v1698_v0 }
 0x622   :  { %987 = vmatpush1.bf16.msra.mxu0 %v1671_v15  ;;  %1503 = vmatpush3.bf16.msra.mxu1 %v1857_v21 }
 0x623   :  { %988 = vmatprep.subr.bf16.mxu0 %v1672_v27  ;;  %1504 = vmatprep.subr.bf16.mxu1 %v1698_v0 }
 0x626   :  { %989 = vmatpush1.bf16.msra.mxu0 %v1824_v16  ;;  %1505 = vmatpush3.bf16.msra.mxu1 %v1871_v23  ;;  %v1256_v16 = vld [vmem:[%s2270_s0 + $0x48] sm:$0xff] }
 0x627   :  { %990 = vmatprep.subr.bf16.mxu0 %v1830_v17  ;;  %1506 = vmatprep.subr.bf16.mxu1 %v1698_v0  ;;  %v952_v17 = vunpack.c.l.bf16 %v1256_v16 }
 0x62a   :  { %991 = vmatpush1.bf16.msra.mxu0 %v1843_v19  ;;  %1507 = vmatpush3.bf16.msra.mxu1 %v1879_v24 }
 0x62b   :  { %992 = vmatprep.subr.bf16.mxu0 %v1851_v20  ;;  %1508 = vmatprep.subr.bf16.mxu1 %v1698_v0  ;;  %v953_v20 = vunpack.c.h.bf16 %v1256_v16 }
 0x62e   :  { %993 = vmatpush1.bf16.msra.mxu0 %v1864_v22  ;;  %1509 = vmatpush3.bf16.msra.mxu1 %v1889_v26 }
 0x62f   :  { %1514 = vmatprep.subr.bf16.mxu0 %v1698_v0 }
 0x6d1   :  { %v902_v18 = vpop.f32.mrf.mxu0  ;;  %v943_v21 = vpop.f32.mrf.mxu1 }
 0x6d2   :  { %v955_v19 = vadd.f32 %v952_v17, %v902_v18  ;;  %v969_v5 = vadd.f32 %v1933_v45, %v943_v21 }
 0x6d3   :  { %v904_v23 = vpop.f32.mrf.mxu0  ;;  %v1492_v24 = vpop.f32.mrf.mxu1 }
 0x6d4   :  { %v1258_v28 = vmul.f32 -1.442695, %v955_v19  ;;  %v962_v26 = vadd.f32 %v953_v20, %v904_v23  ;;  %v1264_v20 = vld [vmem:[%s2274_s4] ss:$0 sm:$0xff] }
 0x6d5   :  { %v906_v29 = vpop.f32.mrf.mxu0  ;;  %v946_v30 = vpop.f32.mrf.mxu1 }
 0x6d6   :  { %1641 = vpow2.f32 %v1258_v28  ;;  %v1259_v32 = vmul.f32 -1.442695, %v962_v26 }
 0x6d7   :  { %v907_v22 = vpop.f32.mrf.mxu0  ;;  %v1493_v31 = vpop.f32.mrf.mxu1 }
 0x6d8   :  { %1643 = vpow2.f32 %v1259_v32 }
 0x6e3   :  { %v1642_v33 = vpop.eup %1641 }
 0x6e4   :  { %v959_v35 = vadd.f32 1.0, %v1642_v33 }
 0x6e5   :  { %v1644_v36 = vpop.eup %1643 }
 0x6e6   :  { %1645 = vrcp.f32 %v959_v35  ;;  %v966_v3 = vadd.f32 1.0, %v1644_v36 }
 0x6e8   :  { %1647 = vrcp.f32 %v966_v3 }
 0x6f3   :  { %v1646_v6 = vpop.eup %1645 }
 0x6f4   :  { %v970_v7 = vmul.f32 %v1646_v6, %v969_v5 }
 0x6f5   :  { %v1648_v9 = vpop.eup %1647 }
 0x6f6   :  { %v971_v8 = vadd.f32 %v970_v7, %v954_v4  ;;  %v973_v10 = vsub.f32 1.0, %v1648_v9  ;;  %v975_v13 = vmul.f32 %v1648_v9, %v2177_v46  ;;  %v1063_v46 = vunpack.c.h.bf16 %v1260_v47 }
 0x6f8   :  { %1649 = vtanh.f32 %v971_v8 }
 0x705   :  { %v1650_v11 = vpop.eup %1649 }
 0x706   :  { %v974_v12 = vmul.f32 %v1650_v11, %v973_v10 }
 0x708   :  { %v976_v14 = vadd.f32 %v975_v13, %v974_v12 }
 0x70a   :  { %v977_v38 = vpack.c.bf16 %v976_v14, %v976_v14 }
 0x70c   :  { %1011 = vmatmul.mubr.bf16.vlgmr.msra.gmra.mxu0 %v977_v38  ;;  %1511 = vmatmul.mubr.bf16.vlgmr.msra.gmra.mxu1 %v977_v38 }
 0x70d   :  { %1530 = vmatprep.mubr.msk.bf16.mxu0 %vm1700_vm0, %v1698_v0  ;;  %1515 = vmatpush3.bf16.msra.mxu0 %v1573_v2 }
 0x70e   :  { %1516 = vmatprep.subr.bf16.mxu0 %v1698_v0 }
 0x711   :  { %1517 = vmatpush3.bf16.msra.mxu0 %v1574_v39 }
 0x712   :  { %1518 = vmatprep.subr.bf16.mxu0 %v1698_v0 }
 0x715   :  { %1519 = vmatpush3.bf16.msra.mxu0 %v1575_v40 }
 0x716   :  { %1520 = vmatprep.subr.bf16.mxu0 %v1698_v0 }
 0x719   :  { %1521 = vmatpush3.bf16.msra.mxu0 %v1576_v41 }
 0x71a   :  { %1522 = vmatprep.subr.bf16.mxu0 %v1698_v0 }
 0x71d   :  { %1523 = vmatpush3.bf16.msra.mxu0 %v1577_v42 }
 0x71e   :  { %1524 = vmatprep.subr.bf16.mxu0 %v1698_v0 }
 0x721   :  { %1525 = vmatpush3.bf16.msra.mxu0 %v1578_v34 }
 0x722   :  { %1526 = vmatprep.subr.bf16.mxu0 %v1698_v0 }
 0x725   :  { %1527 = vmatpush3.bf16.msra.mxu0 %v1579_v43 }
 0x726   :  { %1528 = vmatprep.subr.bf16.mxu0 %v1698_v0 }
 0x729   :  { %1529 = vmatpush3.bf16.msra.mxu0 %v1580_v44 }
 0x7cc   :  { %v1012_v49 = vpop.f32.mrf.mxu0  ;;  %v1053_v50 = vpop.f32.mrf.mxu1 }
 0x7cd   :  { %v1065_v51 = vadd.f32 %v1062_v48, %v1012_v49  ;;  %v1079_v25 = vadd.f32 %v1933_v45, %v1053_v50 }
 0x7ce   :  { %v1014_v52 = vpop.f32.mrf.mxu0  ;;  %v1512_v53 = vpop.f32.mrf.mxu1 }
 0x7cf   :  { %v1262_v54 = vmul.f32 -1.442695, %v1065_v51  ;;  %v1072_v59 = vadd.f32 %v1063_v46, %v1014_v52 }
 0x7d0   :  { %v1016_v55 = vpop.f32.mrf.mxu0  ;;  %v1056_v56 = vpop.f32.mrf.mxu1 }
 0x7d1   :  { %1651 = vpow2.f32 %v1262_v54  ;;  %v1263_v0 = vmul.f32 -1.442695, %v1072_v59 }
 0x7d2   :  { %v1017_v57 = vpop.f32.mrf.mxu0  ;;  %v1513_v58 = vpop.f32.mrf.mxu1 }
 0x7d3   :  { %1653 = vpow2.f32 %v1263_v0 }
 0x7de   :  { %v1652_v60 = vpop.eup %1651 }
 0x7df   :  { %v1069_v61 = vadd.f32 1.0, %v1652_v60 }
 0x7e0   :  { %v1654_v1 = vpop.eup %1653 }
 0x7e1   :  { %1655 = vrcp.f32 %v1069_v61  ;;  %v1076_v62 = vadd.f32 1.0, %v1654_v1 }
 0x7e3   :  { %1657 = vrcp.f32 %v1076_v62 }
 0x7ee   :  { %v1656_v15 = vpop.eup %1655 }
 0x7ef   :  { %v1080_v27 = vmul.f32 %v1656_v15, %v1079_v25 }
 0x7f0   :  { %v1658_v17 = vpop.eup %1657 }
 0x7f1   :  { %v1081_v16 = vadd.f32 %v1080_v27, %v1064_v63  ;;  %v1083_v18 = vsub.f32 1.0, %v1658_v17  ;;  %v1085_v23 = vmul.f32 %v1658_v17, %v976_v14 }
 0x7f3   :  { %1659 = vtanh.f32 %v1081_v16 }
 0x800   :  { %v1660_v21 = vpop.eup %1659 }
 0x801   :  { %v1084_v19 = vmul.f32 %v1660_v21, %v1083_v18 }
 0x803   :  { %v1086_v24 = vadd.f32 %v1085_v23, %v1084_v19 }
 0x805   :  { %v1091_v28 = vpack.c.bf16 %v1086_v24, %v1086_v24 }
 0x807   :  { %1531 = vmatmul.mubr.bf16.vlgmr.msra.gmra.mxu0 %v1091_v28 }
 0x8c7   :  { %v1197_v29 = vpop.f32.mrf.mxu0 }
 0x8c8   :  { %v1198_v30 = vadd.f32 %v1264_v20, %v1197_v29 }
 0x8c9   :  { %v1532_v45 = vpop.f32.mrf.mxu0 }
 0x8ca   :  { %1203 = vst [vmem:[%s2275_s5] sm:$0xff] %v1198_v30 }
 0x8cb   :  { %v1200_v22 = vpop.f32.mrf.mxu0 }
 0x8cd   :  { %v1533_v31 = vpop.f32.mrf.mxu0 }
 0x8ce   :  { %1208 = vsyncpa [#allocation4], 1 }

</bundles_post_ra>
